<compile_context>
chip_gen: v6e
topology: v6e:2x2x1
jax: 0.10.0
libtpu: 0.0.40
codegen_flags: <defaults>
</compile_context>

<pallas_src>
import functools

import jax
import jax.numpy as jnp
from jax import lax
from jax.experimental import pallas as pl
from jax.experimental.pallas import tpu as pltpu

IN_CH = 32                 # in_channels (must be a multiple of patch_dim)
PATCH = 16                 # self.patch_dim
HEADS = 8                  # self.head_cnt
HEAD_DIM = PATCH // HEADS  # 2
L = IN_CH // PATCH         # number of patches per row (attention seq len) = 2
EPS = 1e-5                 # torch.nn.LayerNorm default eps

LANES = 128
ROWS_PER_VROW = LANES // IN_CH   # 4 logical rows packed per 128-lane vector row


def _fast_recip(x):
    # EUP approximate reciprocal + one Newton step -> ~f32-exact, no VPU divide.
    r = pl.reciprocal(x, approx=True)
    return r * (2.0 - x * r)


def _erf(x):
    # Abramowitz & Stegun 7.1.26 rational approximation, max abs error ~1.5e-7.
    a1, a2, a3, a4, a5 = 0.254829592, -0.284496736, 1.421413741, -1.453152027, 1.061405429
    p = 0.3275911
    s = jnp.where(x >= 0.0, 1.0, -1.0)
    ax = jnp.abs(x)
    t = _fast_recip(1.0 + p * ax)
    y = 1.0 - (((((a5 * t + a4) * t + a3) * t + a2) * t + a1) * t) * jnp.exp(-ax * ax)
    return s * y


def _gelu(x):
    # exact (erf-based) GELU, matching torch.nn.GELU() default.
    # (tanh-GELU would shave ~10 VALU ops/elem but adds ~4e-4 error; kept exact.)
    return 0.5 * x * (1.0 + _erf(x * 0.7071067811865476))


def dt_block_kernel(paired, x_ref, *refs):
    """paired=True: K=256 block-diag pairings (v6e/v7x); False: K=128 (<=v5)."""
    o_ref = refs[-1]
    x = x_ref[...]                                    # (TM, 128) f32, 4 rows/lane-row

    # ---- LayerNorm over each 32-lane group (segmented via block-diag avg) ----
    if paired:
        (seg2_ref, gamma_ref, beta_ref, wproj_ref, bproj_ref,
         mpair2_ref, wtail_ref, btail_ref) = refs[:-1]
        # One K=256 pass: [mean | E[x^2]]; kept in f32 (rsqrt amplifies error).
        stats = jnp.dot(jnp.concatenate([x, x * x], axis=-1), seg2_ref[...],
                        preferred_element_type=jnp.float32)
        mean = stats[:, :LANES]
        var = jnp.maximum(stats[:, LANES:] - mean * mean, 0.0)
    else:
        (seg_ref, gamma_ref, beta_ref, wproj_ref, bproj_ref,
         mpair_ref, wout_ref, bout_ref, w2_ref, b2_ref) = refs[:-1]
        seg = seg_ref[...]                            # (128,128) = kron(I4, ones/32)
        mean = jnp.dot(x, seg, preferred_element_type=jnp.float32)
        xc = x - mean
        var = jnp.dot(xc * xc, seg, preferred_element_type=jnp.float32)

    x1 = (x - mean) * lax.rsqrt(var + EPS) * gamma_ref[...] + beta_ref[...]

    # ---- fused projection: [Q | K | K_swap | V | V_swap | MLP-hidden] --------
    # qkv_proj + MHA in_proj + q-scale + patch-swap + mlp[0] all folded on host.
    mxu_dt = wproj_ref.dtype                          # f32 default, bf16 optional
    proj = jnp.dot(x1.astype(mxu_dt), wproj_ref[...],
                   preferred_element_type=jnp.float32) + bproj_ref[...]
    q = proj[:, 0 * LANES:1 * LANES]
    k = proj[:, 1 * LANES:2 * LANES]
    ks = proj[:, 2 * LANES:3 * LANES]                 # keys of the *other* patch
    v = proj[:, 3 * LANES:4 * LANES]
    vs = proj[:, 4 * LANES:5 * LANES]                 # values of the *other* patch
    h = _gelu(proj[:, 5 * LANES:6 * LANES])           # MLP hidden activation

    # ---- per-head (head_dim=2) scores: block pair-sum matmul ------------------
    if paired:
        sc = jnp.dot(jnp.concatenate([q * k, q * ks], axis=-1).astype(mxu_dt),
                     mpair2_ref[...], preferred_element_type=jnp.float32)
        s_same, s_cross = sc[:, :LANES], sc[:, LANES:]
    else:
        mpair = mpair_ref[...]
        s_same = jnp.dot((q * k).astype(mxu_dt), mpair,
                         preferred_element_type=jnp.float32)
        s_cross = jnp.dot((q * ks).astype(mxu_dt), mpair,
                          preferred_element_type=jnp.float32)

    # Softmax over the 2 key positions, fully elementwise.
    m = jnp.maximum(s_same, s_cross)
    e_same = jnp.exp(s_same - m)
    e_cross = jnp.exp(s_cross - m)
    inv = _fast_recip(e_same + e_cross)
    attn = (e_same * v + e_cross * vs) * inv          # single post-combine scale

    # ---- tails: attention out_proj and mlp[2] ---------------------------------
    if paired:
        tail = jnp.dot(jnp.concatenate([attn, h], axis=-1).astype(mxu_dt),
                       wtail_ref[...], preferred_element_type=jnp.float32) + btail_ref[...]
        att = tail[:, :LANES]
        mlp = _gelu(tail[:, LANES:])
    else:
        att = jnp.dot(attn.astype(mxu_dt), wout_ref[...],
                      preferred_element_type=jnp.float32) + bout_ref[...]
        mlp = _gelu(jnp.dot(h.astype(mxu_dt), w2_ref[...],
                            preferred_element_type=jnp.float32) + b2_ref[...])

    # ---- residual sum ---------------------------------------------------------
    o_ref[...] = x + att + mlp


def _blockdiag(a, b):
    za = jnp.zeros((a.shape[0], b.shape[1]), a.dtype)
    zb = jnp.zeros((b.shape[0], a.shape[1]), b.dtype)
    return jnp.block([[a, za], [zb, b]])


def _default_paired():
    # v6e/v7x have a 256-deep MXU contraction -> pair independent K=128 matmuls
    # into one K=256 block-diag pass.  On <=v5 (128-deep MXU) keep K=128.
    try:
        kind = jax.devices()[0].device_kind.lower()
    except Exception:
        return True
    return not any(t in kind for t in ("v2", "v3", "v4", "v5"))


def pack_params(params, *, paired=True, mxu_dtype=jnp.float32):
    """Fold / lift the PyTorch-layout parameters into 128-lane-dense constants."""
    f32 = jnp.float32
    I4 = jnp.eye(ROWS_PER_VROW, dtype=f32)
    I8 = jnp.eye(ROWS_PER_VROW * L, dtype=f32)          # 8 patches per packed row
    P = PATCH

    # Segmented mean operator: per-32-lane-group average broadcast back.
    seg = jnp.kron(I4, jnp.full((IN_CH, IN_CH), 1.0 / IN_CH, f32))          # (128,128)
    gamma = jnp.tile(params["gamma"].astype(f32), (1, ROWS_PER_VROW))       # (1,128)
    beta = jnp.tile(params["beta"].astype(f32), (1, ROWS_PER_VROW))

    wqkv, bqkv = params["wqkv_t"], params["bqkv"]        # (16,48), (1,48)
    win, binp = params["win_t"], params["bin_"]          # (16,48), (1,48)
    scale = 1.0 / (HEAD_DIM ** 0.5)

    # Fold qkv_proj + MHA in_proj (+ q scaling) into one linear per q/k/v.
    wq = (wqkv[:, :P] @ win[:, :P]) * scale
    bq = (bqkv[:, :P] @ win[:, :P] + binp[:, :P]) * scale
    wk = wqkv[:, P:2 * P] @ win[:, P:2 * P]
    bk = bqkv[:, P:2 * P] @ win[:, P:2 * P] + binp[:, P:2 * P]
    wv = wqkv[:, 2 * P:] @ win[:, 2 * P:]
    bv = bqkv[:, 2 * P:] @ win[:, 2 * P:] + binp[:, 2 * P:]

    WQ, WK, WV = (jnp.kron(I8, w) for w in (wq, wk, wv))                    # (128,128)

    # Patch-swap permutation within each 32-lane (one logical row) block.
    swap_blk = jnp.block([[jnp.zeros((P, P), f32), jnp.eye(P, dtype=f32)],
                          [jnp.eye(P, dtype=f32), jnp.zeros((P, P), f32)]])
    swap = jnp.kron(I4, swap_blk)                                           # (128,128)

    # mlp[0] lifted and fused into the projection (768-wide output).
    W1 = jnp.kron(I4, params["w1_t"].astype(f32))                           # (128,128)
    b1_t = jnp.tile(params["b1"].astype(f32), (1, ROWS_PER_VROW))

    w_proj = jnp.concatenate([WQ, WK, WK @ swap, WV, WV @ swap, W1], axis=1)  # (128,768)
    bq_t, bk_t, bv_t = (jnp.tile(b, (1, ROWS_PER_VROW * L)) for b in (bq, bk, bv))
    # biases are 16-periodic, so the swapped copies keep the same bias.
    b_proj = jnp.concatenate([bq_t, bk_t, bk_t, bv_t, bv_t, b1_t], axis=1)  # (1,768)

    # Per-head (pairs of adjacent lanes) sum, broadcast to both lanes.
    mpair = jnp.kron(jnp.eye(LANES // HEAD_DIM, dtype=f32),
                     jnp.ones((HEAD_DIM, HEAD_DIM), f32))                   # (128,128)

    w_out = jnp.kron(I8, params["wout_t"].astype(f32))                      # (128,128)
    b_out = jnp.tile(params["bout"].astype(f32), (1, ROWS_PER_VROW * L))    # (1,128)
    w2 = jnp.kron(I4, params["w2_t"].astype(f32))
    b2 = jnp.tile(params["b2"].astype(f32), (1, ROWS_PER_VROW))

    dt = jnp.dtype(mxu_dtype)
    w_proj = w_proj.astype(dt)        # biases stay f32 (added after f32-accum matmul)
    if paired:
        seg2 = _blockdiag(seg, seg)                       # LN stats stay f32
        mpair2 = _blockdiag(mpair, mpair).astype(dt)
        w_tail = _blockdiag(w_out, w2).astype(dt)
        b_tail = jnp.concatenate([b_out, b2], axis=1)     # (1,256)
        return (seg2, gamma, beta, w_proj, b_proj, mpair2, w_tail, b_tail)
    return (seg, gamma, beta, w_proj, b_proj,
            mpair.astype(dt), w_out.astype(dt), b_out, w2.astype(dt), b2)


def dt_block_forward(x, edge_index, edge_attr, params, *, tm=1024, paired=None,
                     mxu_dtype=jnp.float32):
    """tm = tile size in *packed* rows (each packed row = 4 logical rows).

    Default tm=1024 -> 512 KiB x-tile per step (well past the ~0.35 us per-step
    pipeline overhead); with ~1.3 MiB of grid-invariant weight constants and the
    (tm,256)/(tm,768) f32 intermediates this stays around ~15 MiB of VMEM, inside
    every chip's budget with vmem_limit_bytes=48 MiB.  Use small tm (e.g. 8) only
    for tests.  mxu_dtype=jnp.bfloat16 enables full-rate MXU operands (LayerNorm
    statistics and all accumulation stay f32) — validate tolerance before using.
    """
    # edge_index / edge_attr are unused by DTBlock.forward (signature parity).
    del edge_index, edge_attr
    N, C = x.shape
    assert C == IN_CH and LANES % IN_CH == 0

    if paired is None:
        paired = _default_paired()
    weights = pack_params(params, paired=paired, mxu_dtype=mxu_dtype)

    tm = max(8, (int(tm) // 8) * 8)                      # sublane-aligned tile
    n_pack = -(-N // ROWS_PER_VROW)                      # packed rows needed
    n_pack8 = -(-n_pack // 8) * 8
    tm_p = min(tm, n_pack8)                              # clamp tile to data size
    # Keep >= 2 grid steps when there is enough data so the "parallel" axis can
    # shard across both TensorCores on v7x (single-TC chips are unaffected).
    if n_pack8 >= 16 and tm_p >= n_pack:
        tm_p = max(8, ((n_pack8 // 2 + 7) // 8) * 8)
    n_pad = -(-n_pack // tm_p) * tm_p                    # padded packed rows
    pad_rows = n_pad * ROWS_PER_VROW - N
    xp = jnp.pad(x, ((0, pad_rows), (0, 0))).reshape(n_pad, LANES)

    in_specs = [pl.BlockSpec((tm_p, LANES), lambda i: (i, 0))]
    # Grid-invariant weight blocks (index_map always (0,0) -> DMA'd once).
    # TODO(synk): on v7x, pipeline_mode=pl.Buffered(1) on these specs would
    # reclaim the redundant second constant buffer if tm is pushed very high.
    in_specs += [pl.BlockSpec(w.shape, lambda i: (0, 0)) for w in weights]

    weight_bytes = sum(int(w.size) * w.dtype.itemsize for w in weights)
    macs_row = (3 * 256 * 256 + LANES * 768) if paired else (6 * LANES * LANES + LANES * 768)
    cost = pl.CostEstimate(
        flops=2 * macs_row * int(n_pad),
        transcendentals=8 * LANES * int(n_pad),          # exp / rsqrt / recip
        bytes_accessed=int(2 * n_pad * LANES * 4 + weight_bytes),  # weights counted once
    )

    out = pl.pallas_call(
        functools.partial(dt_block_kernel, paired),
        out_shape=jax.ShapeDtypeStruct((n_pad, LANES), x.dtype),
        grid=(n_pad // tm_p,),
        in_specs=in_specs,
        out_specs=pl.BlockSpec((tm_p, LANES), lambda i: (i, 0)),
        compiler_params=pltpu.CompilerParams(
            dimension_semantics=("parallel",),
            vmem_limit_bytes=48 * 1024 * 1024,
        ),
        cost_estimate=cost,
    )(xp, *weights)

    return out.reshape(n_pad * ROWS_PER_VROW, IN_CH)[:N]


def init_params(key):
    C, P = IN_CH, PATCH
    ks = jax.random.split(key, 10)

    def lin(k, fan_in, shape):
        bound = 1.0 / (fan_in ** 0.5)
        return jax.random.uniform(k, shape, jnp.float32, -bound, bound)

    return dict(
        gamma=jnp.ones((1, C), jnp.float32),                  # norm1.weight
        beta=jnp.zeros((1, C), jnp.float32),                  # norm1.bias
        wqkv_t=lin(ks[0], P, (P, 3 * P)),                     # qkv_proj.weight.T
        bqkv=lin(ks[1], P, (1, 3 * P)),                       # qkv_proj.bias
        win_t=lin(ks[2], P, (P, 3 * P)),                      # mha.in_proj_weight.T
        bin_=0.1 * lin(ks[3], P, (1, 3 * P)),                 # mha.in_proj_bias
        wout_t=lin(ks[4], P, (P, P)),                         # mha.out_proj.weight.T
        bout=0.1 * lin(ks[5], P, (1, P)),                     # mha.out_proj.bias
        w1_t=lin(ks[6], C, (C, C)),                           # mlp[0].weight.T
        b1=lin(ks[7], C, (1, C)),                             # mlp[0].bias
        w2_t=lin(ks[8], C, (C, C)),                           # mlp[2].weight.T
        b2=lin(ks[9], C, (1, C)),                             # mlp[2].bias
    )


def dt_block_reference(x, params):
    """Pure-JAX reference mirroring the PyTorch forward (eval mode)."""
    gamma, beta = params["gamma"][0], params["beta"][0]
    mean = jnp.mean(x, axis=-1, keepdims=True)
    var = jnp.mean((x - mean) ** 2, axis=-1, keepdims=True)
    x1 = (x - mean) / jnp.sqrt(var + EPS) * gamma + beta
    N, C = x.shape
    xp = x1.reshape(N, C // PATCH, PATCH)
    qkv = xp @ params["wqkv_t"] + params["bqkv"][0]
    q, k, v = jnp.split(qkv, 3, axis=-1)
    win, bi = params["win_t"], params["bin_"][0]
    q2 = q @ win[:, :PATCH] + bi[:PATCH]
    k2 = k @ win[:, PATCH:2 * PATCH] + bi[PATCH:2 * PATCH]
    v2 = v @ win[:, 2 * PATCH:] + bi[2 * PATCH:]

    def heads(t):
        return t.reshape(N, -1, HEADS, HEAD_DIM).transpose(0, 2, 1, 3)

    qh, kh, vh = heads(q2), heads(k2), heads(v2)
    scores = jnp.einsum("bhld,bhmd->bhlm", qh, kh) / (HEAD_DIM ** 0.5)
    attn = jax.nn.softmax(scores, axis=-1)
    oh = jnp.einsum("bhlm,bhmd->bhld", attn, vh)
    o = oh.transpose(0, 2, 1, 3).reshape(N, -1, PATCH)
    att = (o @ params["wout_t"] + params["bout"][0]).reshape(N, C)
    h = jax.nn.gelu(x1 @ params["w1_t"] + params["b1"][0], approximate=False)
    mlp = jax.nn.gelu(h @ params["w2_t"] + params["b2"][0], approximate=False)
    return x + att + mlp


if __name__ == "__main__":
    key = jax.random.PRNGKey(0)
    kx, kx2, kp = jax.random.split(key, 3)
    params = init_params(kp)

    edge_index = jnp.zeros((2, 4), jnp.int32)     # unused by forward
    edge_attr = jnp.zeros((4, 3), jnp.float32)    # unused by forward

    # Small shape (as implied by the module: batch=8, in_channels=32).
    x = jax.random.normal(kx, (8, IN_CH), jnp.float32)
    ref = dt_block_reference(x, params)
    out = dt_block_forward(x, edge_index, edge_attr, params)
    jax.block_until_ready(out)
    assert out.shape == x.shape
    assert jnp.allclose(out, ref, atol=1e-3, rtol=1e-3), float(jnp.max(jnp.abs(out - ref)))

    # Padded-tail + >=2-step-grid (megacore) path with the default tile logic.
    x2 = jax.random.normal(kx2, (200, IN_CH), jnp.float32)
    ref2 = dt_block_reference(x2, params)
    out2 = dt_block_forward(x2, edge_index, edge_attr, params)
    jax.block_until_ready(out2)
    assert jnp.allclose(out2, ref2, atol=1e-3, rtol=1e-3), float(jnp.max(jnp.abs(out2 - ref2)))

    # Exercise the non-default MXU-depth variant (paired K=256 vs K=128) and the
    # many-step grid with a tiny tile (test-only tm).
    out3 = dt_block_forward(x2, edge_index, edge_attr, params, tm=8,
                            paired=not _default_paired())
    jax.block_until_ready(out3)
    assert jnp.allclose(out3, ref2, atol=1e-3, rtol=1e-3), float(jnp.max(jnp.abs(out3 - ref2)))

    # Optional bf16 MXU-operand mode (full MXU rate); per the perf review it is
    # validated at a looser tolerance and therefore stays opt-in.
    out4 = dt_block_forward(x, edge_index, edge_attr, params, mxu_dtype=jnp.bfloat16)
    jax.block_until_ready(out4)
    assert jnp.allclose(out4, ref, atol=2e-2, rtol=2e-2), float(jnp.max(jnp.abs(out4 - ref)))

    print("KERNEL_OK")
</pallas_src>

<mosaic_0001>
module attributes {stable_mosaic.version = 11 : i64} {
  func.func @dt_block_kernel(%arg0: i32, %arg1: memref<8x128xf32, #tpu.memory_space<vmem>>, %arg2: memref<256x256xf32, #tpu.memory_space<vmem>>, %arg3: memref<1x128xf32, #tpu.memory_space<vmem>>, %arg4: memref<1x128xf32, #tpu.memory_space<vmem>>, %arg5: memref<128x768xf32, #tpu.memory_space<vmem>>, %arg6: memref<1x768xf32, #tpu.memory_space<vmem>>, %arg7: memref<256x256xf32, #tpu.memory_space<vmem>>, %arg8: memref<256x256xf32, #tpu.memory_space<vmem>>, %arg9: memref<1x256xf32, #tpu.memory_space<vmem>>, %arg10: memref<8x128xf32, #tpu.memory_space<vmem>>) attributes {dimension_semantics = [#tpu.dimension_semantics<parallel>], iteration_bounds = array<i64: 1>, scalar_prefetch = 0 : i64, scratch_operands = 0 : i64, tpu.core_type = #tpu.core_type<tc>, window_params = [{transform_indices = @transform_0, window_bounds = array<i64: 8, 128>}, {pipeline_mode = #tpu.pipeline_mode<synchronous>, transform_indices = @transform_1, window_bounds = array<i64: 256, 256>}, {pipeline_mode = #tpu.pipeline_mode<synchronous>, transform_indices = @transform_2, window_bounds = array<i64: 1, 128>}, {pipeline_mode = #tpu.pipeline_mode<synchronous>, transform_indices = @transform_3, window_bounds = array<i64: 1, 128>}, {pipeline_mode = #tpu.pipeline_mode<synchronous>, transform_indices = @transform_4, window_bounds = array<i64: 128, 768>}, {pipeline_mode = #tpu.pipeline_mode<synchronous>, transform_indices = @transform_5, window_bounds = array<i64: 1, 768>}, {pipeline_mode = #tpu.pipeline_mode<synchronous>, transform_indices = @transform_6, window_bounds = array<i64: 256, 256>}, {pipeline_mode = #tpu.pipeline_mode<synchronous>, transform_indices = @transform_7, window_bounds = array<i64: 256, 256>}, {pipeline_mode = #tpu.pipeline_mode<synchronous>, transform_indices = @transform_8, window_bounds = array<i64: 1, 256>}, {transform_indices = @transform_9, window_bounds = array<i64: 8, 128>}]} {
    %c0 = arith.constant 0 : index
    %c0_0 = arith.constant 0 : index
    %0 = vector.load %arg1[%c0, %c0_0] : memref<8x128xf32, #tpu.memory_space<vmem>>, vector<8x128xf32>
    %1 = arith.mulf %0, %0 : vector<8x128xf32>
    %2 = tpu.concatenate %0, %1 in 1 : vector<8x128xf32>, vector<8x128xf32> -> vector<8x256xf32>
    %c0_1 = arith.constant 0 : index
    %c0_2 = arith.constant 0 : index
    %3 = vector.load %arg2[%c0_1, %c0_2] : memref<256x256xf32, #tpu.memory_space<vmem>>, vector<256x256xf32>
    %cst = arith.constant dense<0.000000e+00> : vector<8x256xf32>
    %4 = tpu.matmul %2, %3, %cst {dimension_numbers = #tpu.dot_dimension_numbers<[1], [0], [0], [1], [0, 0, 1, 1], [], []>} : vector<8x256xf32>, vector<256x256xf32>, vector<8x256xf32> -> vector<8x256xf32>
    %5 = vector.extract_strided_slice %4 {offsets = [0, 0], sizes = [8, 128], strides = [1, 1]} : vector<8x256xf32> to vector<8x128xf32>
    %6 = vector.extract_strided_slice %4 {offsets = [0, 128], sizes = [8, 128], strides = [1, 1]} : vector<8x256xf32> to vector<8x128xf32>
    %7 = arith.mulf %5, %5 : vector<8x128xf32>
    %8 = arith.subf %6, %7 : vector<8x128xf32>
    %cst_3 = arith.constant 0.000000e+00 : f32
    %9 = vector.broadcast %cst_3 : f32 to vector<8x128xf32>
    %10 = arith.maximumf %8, %9 : vector<8x128xf32>
    %11 = arith.subf %0, %5 : vector<8x128xf32>
    %cst_4 = arith.constant 9.99999974E-6 : f32
    %12 = vector.broadcast %cst_4 : f32 to vector<8x128xf32>
    %13 = arith.addf %10, %12 : vector<8x128xf32>
    %14 = math.rsqrt %13 : vector<8x128xf32>
    %15 = arith.mulf %11, %14 : vector<8x128xf32>
    %c0_5 = arith.constant 0 : index
    %c0_6 = arith.constant 0 : index
    %16 = vector.load %arg3[%c0_5, %c0_6] : memref<1x128xf32, #tpu.memory_space<vmem>>, vector<1x128xf32>
    %17 = vector.broadcast %16 : vector<1x128xf32> to vector<8x128xf32>
    %18 = arith.mulf %15, %17 : vector<8x128xf32>
    %c0_7 = arith.constant 0 : index
    %c0_8 = arith.constant 0 : index
    %19 = vector.load %arg4[%c0_7, %c0_8] : memref<1x128xf32, #tpu.memory_space<vmem>>, vector<1x128xf32>
    %20 = vector.broadcast %19 : vector<1x128xf32> to vector<8x128xf32>
    %21 = arith.addf %18, %20 : vector<8x128xf32>
    %c0_9 = arith.constant 0 : index
    %c0_10 = arith.constant 0 : index
    %22 = vector.load %arg5[%c0_9, %c0_10] : memref<128x768xf32, #tpu.memory_space<vmem>>, vector<128x768xf32>
    %cst_11 = arith.constant dense<0.000000e+00> : vector<8x768xf32>
    %23 = tpu.matmul %21, %22, %cst_11 {dimension_numbers = #tpu.dot_dimension_numbers<[1], [0], [0], [1], [0, 0, 1, 1], [], []>} : vector<8x128xf32>, vector<128x768xf32>, vector<8x768xf32> -> vector<8x768xf32>
    %c0_12 = arith.constant 0 : index
    %c0_13 = arith.constant 0 : index
    %24 = vector.load %arg6[%c0_12, %c0_13] : memref<1x768xf32, #tpu.memory_space<vmem>>, vector<1x768xf32>
    %25 = vector.broadcast %24 : vector<1x768xf32> to vector<8x768xf32>
    %26 = arith.addf %23, %25 : vector<8x768xf32>
    %27 = vector.extract_strided_slice %26 {offsets = [0, 0], sizes = [8, 128], strides = [1, 1]} : vector<8x768xf32> to vector<8x128xf32>
    %28 = vector.extract_strided_slice %26 {offsets = [0, 128], sizes = [8, 128], strides = [1, 1]} : vector<8x768xf32> to vector<8x128xf32>
    %29 = vector.extract_strided_slice %26 {offsets = [0, 256], sizes = [8, 128], strides = [1, 1]} : vector<8x768xf32> to vector<8x128xf32>
    %30 = vector.extract_strided_slice %26 {offsets = [0, 384], sizes = [8, 128], strides = [1, 1]} : vector<8x768xf32> to vector<8x128xf32>
    %31 = vector.extract_strided_slice %26 {offsets = [0, 512], sizes = [8, 128], strides = [1, 1]} : vector<8x768xf32> to vector<8x128xf32>
    %32 = vector.extract_strided_slice %26 {offsets = [0, 640], sizes = [8, 128], strides = [1, 1]} : vector<8x768xf32> to vector<8x128xf32>
    %cst_14 = arith.constant 5.000000e-01 : f32
    %33 = vector.broadcast %cst_14 : f32 to vector<8x128xf32>
    %34 = arith.mulf %33, %32 : vector<8x128xf32>
    %cst_15 = arith.constant 0.707106769 : f32
    %35 = vector.broadcast %cst_15 : f32 to vector<8x128xf32>
    %36 = arith.mulf %32, %35 : vector<8x128xf32>
    %cst_16 = arith.constant 0.000000e+00 : f32
    %37 = vector.broadcast %cst_16 : f32 to vector<8x128xf32>
    %38 = arith.cmpf oge, %36, %37 : vector<8x128xf32>
    %cst_17 = arith.constant 1.000000e+00 : f32
    %cst_18 = arith.constant -1.000000e+00 : f32
    %39 = vector.broadcast %cst_17 : f32 to vector<8x128xf32>
    %40 = vector.broadcast %cst_18 : f32 to vector<8x128xf32>
    %41 = arith.select %38, %39, %40 : vector<8x128xi1>, vector<8x128xf32>
    %42 = math.absf %36 : vector<8x128xf32>
    %cst_19 = arith.constant 0.327591091 : f32
    %43 = vector.broadcast %cst_19 : f32 to vector<8x128xf32>
    %44 = arith.mulf %43, %42 : vector<8x128xf32>
    %cst_20 = arith.constant 1.000000e+00 : f32
    %45 = vector.broadcast %cst_20 : f32 to vector<8x128xf32>
    %46 = arith.addf %45, %44 : vector<8x128xf32>
    %47 = tpu.reciprocal %46 {approx = true} : vector<8x128xf32> -> vector<8x128xf32>
    %48 = arith.mulf %46, %47 : vector<8x128xf32>
    %cst_21 = arith.constant 2.000000e+00 : f32
    %49 = vector.broadcast %cst_21 : f32 to vector<8x128xf32>
    %50 = arith.subf %49, %48 : vector<8x128xf32>
    %51 = arith.mulf %47, %50 : vector<8x128xf32>
    %cst_22 = arith.constant 1.06140542 : f32
    %52 = vector.broadcast %cst_22 : f32 to vector<8x128xf32>
    %53 = arith.mulf %52, %51 : vector<8x128xf32>
    %cst_23 = arith.constant -1.45315206 : f32
    %54 = vector.broadcast %cst_23 : f32 to vector<8x128xf32>
    %55 = arith.addf %53, %54 : vector<8x128xf32>
    %56 = arith.mulf %55, %51 : vector<8x128xf32>
    %cst_24 = arith.constant 1.42141378 : f32
    %57 = vector.broadcast %cst_24 : f32 to vector<8x128xf32>
    %58 = arith.addf %56, %57 : vector<8x128xf32>
    %59 = arith.mulf %58, %51 : vector<8x128xf32>
    %cst_25 = arith.constant -0.284496725 : f32
    %60 = vector.broadcast %cst_25 : f32 to vector<8x128xf32>
    %61 = arith.addf %59, %60 : vector<8x128xf32>
    %62 = arith.mulf %61, %51 : vector<8x128xf32>
    %cst_26 = arith.constant 0.254829586 : f32
    %63 = vector.broadcast %cst_26 : f32 to vector<8x128xf32>
    %64 = arith.addf %62, %63 : vector<8x128xf32>
    %65 = arith.mulf %64, %51 : vector<8x128xf32>
    %cst_27 = arith.constant 0.000000e+00 : f32
    %66 = vector.broadcast %cst_27 : f32 to vector<8x128xf32>
    %67 = arith.subf %66, %42 : vector<8x128xf32>
    %68 = arith.mulf %67, %42 : vector<8x128xf32>
    %69 = math.exp %68 : vector<8x128xf32>
    %70 = arith.mulf %65, %69 : vector<8x128xf32>
    %cst_28 = arith.constant 1.000000e+00 : f32
    %71 = vector.broadcast %cst_28 : f32 to vector<8x128xf32>
    %72 = arith.subf %71, %70 : vector<8x128xf32>
    %73 = arith.mulf %41, %72 : vector<8x128xf32>
    %cst_29 = arith.constant 1.000000e+00 : f32
    %74 = vector.broadcast %cst_29 : f32 to vector<8x128xf32>
    %75 = arith.addf %74, %73 : vector<8x128xf32>
    %76 = arith.mulf %34, %75 : vector<8x128xf32>
    %77 = arith.mulf %27, %28 : vector<8x128xf32>
    %78 = arith.mulf %27, %29 : vector<8x128xf32>
    %79 = tpu.concatenate %77, %78 in 1 : vector<8x128xf32>, vector<8x128xf32> -> vector<8x256xf32>
    %c0_30 = arith.constant 0 : index
    %c0_31 = arith.constant 0 : index
    %80 = vector.load %arg7[%c0_30, %c0_31] : memref<256x256xf32, #tpu.memory_space<vmem>>, vector<256x256xf32>
    %cst_32 = arith.constant dense<0.000000e+00> : vector<8x256xf32>
    %81 = tpu.matmul %79, %80, %cst_32 {dimension_numbers = #tpu.dot_dimension_numbers<[1], [0], [0], [1], [0, 0, 1, 1], [], []>} : vector<8x256xf32>, vector<256x256xf32>, vector<8x256xf32> -> vector<8x256xf32>
    %82 = vector.extract_strided_slice %81 {offsets = [0, 0], sizes = [8, 128], strides = [1, 1]} : vector<8x256xf32> to vector<8x128xf32>
    %83 = vector.extract_strided_slice %81 {offsets = [0, 128], sizes = [8, 128], strides = [1, 1]} : vector<8x256xf32> to vector<8x128xf32>
    %84 = arith.maximumf %82, %83 : vector<8x128xf32>
    %85 = arith.subf %82, %84 : vector<8x128xf32>
    %86 = math.exp %85 : vector<8x128xf32>
    %87 = arith.subf %83, %84 : vector<8x128xf32>
    %88 = math.exp %87 : vector<8x128xf32>
    %89 = arith.addf %86, %88 : vector<8x128xf32>
    %90 = tpu.reciprocal %89 {approx = true} : vector<8x128xf32> -> vector<8x128xf32>
    %91 = arith.mulf %89, %90 : vector<8x128xf32>
    %cst_33 = arith.constant 2.000000e+00 : f32
    %92 = vector.broadcast %cst_33 : f32 to vector<8x128xf32>
    %93 = arith.subf %92, %91 : vector<8x128xf32>
    %94 = arith.mulf %90, %93 : vector<8x128xf32>
    %95 = arith.mulf %86, %30 : vector<8x128xf32>
    %96 = arith.mulf %88, %31 : vector<8x128xf32>
    %97 = arith.addf %95, %96 : vector<8x128xf32>
    %98 = arith.mulf %97, %94 : vector<8x128xf32>
    %99 = tpu.concatenate %98, %76 in 1 : vector<8x128xf32>, vector<8x128xf32> -> vector<8x256xf32>
    %c0_34 = arith.constant 0 : index
    %c0_35 = arith.constant 0 : index
    %100 = vector.load %arg8[%c0_34, %c0_35] : memref<256x256xf32, #tpu.memory_space<vmem>>, vector<256x256xf32>
    %cst_36 = arith.constant dense<0.000000e+00> : vector<8x256xf32>
    %101 = tpu.matmul %99, %100, %cst_36 {dimension_numbers = #tpu.dot_dimension_numbers<[1], [0], [0], [1], [0, 0, 1, 1], [], []>} : vector<8x256xf32>, vector<256x256xf32>, vector<8x256xf32> -> vector<8x256xf32>
    %c0_37 = arith.constant 0 : index
    %c0_38 = arith.constant 0 : index
    %102 = vector.load %arg9[%c0_37, %c0_38] : memref<1x256xf32, #tpu.memory_space<vmem>>, vector<1x256xf32>
    %103 = vector.broadcast %102 : vector<1x256xf32> to vector<8x256xf32>
    %104 = arith.addf %101, %103 : vector<8x256xf32>
    %105 = vector.extract_strided_slice %104 {offsets = [0, 0], sizes = [8, 128], strides = [1, 1]} : vector<8x256xf32> to vector<8x128xf32>
    %106 = vector.extract_strided_slice %104 {offsets = [0, 128], sizes = [8, 128], strides = [1, 1]} : vector<8x256xf32> to vector<8x128xf32>
    %cst_39 = arith.constant 5.000000e-01 : f32
    %107 = vector.broadcast %cst_39 : f32 to vector<8x128xf32>
    %108 = arith.mulf %107, %106 : vector<8x128xf32>
    %cst_40 = arith.constant 0.707106769 : f32
    %109 = vector.broadcast %cst_40 : f32 to vector<8x128xf32>
    %110 = arith.mulf %106, %109 : vector<8x128xf32>
    %cst_41 = arith.constant 0.000000e+00 : f32
    %111 = vector.broadcast %cst_41 : f32 to vector<8x128xf32>
    %112 = arith.cmpf oge, %110, %111 : vector<8x128xf32>
    %cst_42 = arith.constant 1.000000e+00 : f32
    %cst_43 = arith.constant -1.000000e+00 : f32
    %113 = vector.broadcast %cst_42 : f32 to vector<8x128xf32>
    %114 = vector.broadcast %cst_43 : f32 to vector<8x128xf32>
    %115 = arith.select %112, %113, %114 : vector<8x128xi1>, vector<8x128xf32>
    %116 = math.absf %110 : vector<8x128xf32>
    %cst_44 = arith.constant 0.327591091 : f32
    %117 = vector.broadcast %cst_44 : f32 to vector<8x128xf32>
    %118 = arith.mulf %117, %116 : vector<8x128xf32>
    %cst_45 = arith.constant 1.000000e+00 : f32
    %119 = vector.broadcast %cst_45 : f32 to vector<8x128xf32>
    %120 = arith.addf %119, %118 : vector<8x128xf32>
    %121 = tpu.reciprocal %120 {approx = true} : vector<8x128xf32> -> vector<8x128xf32>
    %122 = arith.mulf %120, %121 : vector<8x128xf32>
    %cst_46 = arith.constant 2.000000e+00 : f32
    %123 = vector.broadcast %cst_46 : f32 to vector<8x128xf32>
    %124 = arith.subf %123, %122 : vector<8x128xf32>
    %125 = arith.mulf %121, %124 : vector<8x128xf32>
    %cst_47 = arith.constant 1.06140542 : f32
    %126 = vector.broadcast %cst_47 : f32 to vector<8x128xf32>
    %127 = arith.mulf %126, %125 : vector<8x128xf32>
    %cst_48 = arith.constant -1.45315206 : f32
    %128 = vector.broadcast %cst_48 : f32 to vector<8x128xf32>
    %129 = arith.addf %127, %128 : vector<8x128xf32>
    %130 = arith.mulf %129, %125 : vector<8x128xf32>
    %cst_49 = arith.constant 1.42141378 : f32
    %131 = vector.broadcast %cst_49 : f32 to vector<8x128xf32>
    %132 = arith.addf %130, %131 : vector<8x128xf32>
    %133 = arith.mulf %132, %125 : vector<8x128xf32>
    %cst_50 = arith.constant -0.284496725 : f32
    %134 = vector.broadcast %cst_50 : f32 to vector<8x128xf32>
    %135 = arith.addf %133, %134 : vector<8x128xf32>
    %136 = arith.mulf %135, %125 : vector<8x128xf32>
    %cst_51 = arith.constant 0.254829586 : f32
    %137 = vector.broadcast %cst_51 : f32 to vector<8x128xf32>
    %138 = arith.addf %136, %137 : vector<8x128xf32>
    %139 = arith.mulf %138, %125 : vector<8x128xf32>
    %cst_52 = arith.constant 0.000000e+00 : f32
    %140 = vector.broadcast %cst_52 : f32 to vector<8x128xf32>
    %141 = arith.subf %140, %116 : vector<8x128xf32>
    %142 = arith.mulf %141, %116 : vector<8x128xf32>
    %143 = math.exp %142 : vector<8x128xf32>
    %144 = arith.mulf %139, %143 : vector<8x128xf32>
    %cst_53 = arith.constant 1.000000e+00 : f32
    %145 = vector.broadcast %cst_53 : f32 to vector<8x128xf32>
    %146 = arith.subf %145, %144 : vector<8x128xf32>
    %147 = arith.mulf %115, %146 : vector<8x128xf32>
    %cst_54 = arith.constant 1.000000e+00 : f32
    %148 = vector.broadcast %cst_54 : f32 to vector<8x128xf32>
    %149 = arith.addf %148, %147 : vector<8x128xf32>
    %150 = arith.mulf %108, %149 : vector<8x128xf32>
    %151 = arith.addf %0, %105 : vector<8x128xf32>
    %152 = arith.addf %151, %150 : vector<8x128xf32>
    %c0_55 = arith.constant 0 : index
    %c0_56 = arith.constant 0 : index
    %153 = vector.load %arg10[%c0_55, %c0_56] : memref<8x128xf32, #tpu.memory_space<vmem>>, vector<8x128xf32>
    tpu.vector_store %arg10[%c0_55, %c0_56], %152 {strides = array<i32>} : memref<8x128xf32, #tpu.memory_space<vmem>>, vector<8x128xf32>,
    return
  }
  func.func @transform_0(%arg0: i32) -> (i32, i32) {
    %c0_i32 = arith.constant 0 : i32
    %c0_i32_0 = arith.constant 0 : i32
    return %arg0, %c0_i32 : i32, i32
  }
  func.func @transform_1(%arg0: i32) -> (i32, i32) {
    %c0_i32 = arith.constant 0 : i32
    %c0_i32_0 = arith.constant 0 : i32
    %c0_i32_1 = arith.constant 0 : i32
    return %c0_i32, %c0_i32_0 : i32, i32
  }
  func.func @transform_2(%arg0: i32) -> (i32, i32) {
    %c0_i32 = arith.constant 0 : i32
    %c0_i32_0 = arith.constant 0 : i32
    %c0_i32_1 = arith.constant 0 : i32
    return %c0_i32, %c0_i32_0 : i32, i32
  }
  func.func @transform_3(%arg0: i32) -> (i32, i32) {
    %c0_i32 = arith.constant 0 : i32
    %c0_i32_0 = arith.constant 0 : i32
    %c0_i32_1 = arith.constant 0 : i32
    return %c0_i32, %c0_i32_0 : i32, i32
  }
  func.func @transform_4(%arg0: i32) -> (i32, i32) {
    %c0_i32 = arith.constant 0 : i32
    %c0_i32_0 = arith.constant 0 : i32
    %c0_i32_1 = arith.constant 0 : i32
    return %c0_i32, %c0_i32_0 : i32, i32
  }
  func.func @transform_5(%arg0: i32) -> (i32, i32) {
    %c0_i32 = arith.constant 0 : i32
    %c0_i32_0 = arith.constant 0 : i32
    %c0_i32_1 = arith.constant 0 : i32
    return %c0_i32, %c0_i32_0 : i32, i32
  }
  func.func @transform_6(%arg0: i32) -> (i32, i32) {
    %c0_i32 = arith.constant 0 : i32
    %c0_i32_0 = arith.constant 0 : i32
    %c0_i32_1 = arith.constant 0 : i32
    return %c0_i32, %c0_i32_0 : i32, i32
  }
  func.func @transform_7(%arg0: i32) -> (i32, i32) {
    %c0_i32 = arith.constant 0 : i32
    %c0_i32_0 = arith.constant 0 : i32
    %c0_i32_1 = arith.constant 0 : i32
    return %c0_i32, %c0_i32_0 : i32, i32
  }
  func.func @transform_8(%arg0: i32) -> (i32, i32) {
    %c0_i32 = arith.constant 0 : i32
    %c0_i32_0 = arith.constant 0 : i32
    %c0_i32_1 = arith.constant 0 : i32
    return %c0_i32, %c0_i32_0 : i32, i32
  }
  func.func @transform_9(%arg0: i32) -> (i32, i32) {
    %c0_i32 = arith.constant 0 : i32
    %c0_i32_0 = arith.constant 0 : i32
    return %arg0, %c0_i32 : i32, i32
  }
}

</mosaic_0001>

<bundles_post_ra>
// kernel: tpu_custom_call.1
= control target key start
LH: loop header
LB: loop body
LE: loop exit
PB: predicated region body
PF: predicated region fallthrough
CT: control target
= control target key end

     0   :  { %14 = vsyncpa [#allocation3], 0  ;;  %s1315_s0 = inlined_call_operand.hbm [shape: f32[8,128], index: 0, kind: input, shape index: {}]   ;;  %s1316_s1 = inlined_call_operand.hbm [shape: f32[256,256], index: 1, kind: input, shape index: {}]   ;;  %s1317_s2 = inlined_call_operand.vmem [shape: f32[1,128], index: 2, kind: input, shape index: {}]   ;;  %s1318_s3 = inlined_call_operand.hbm [shape: f32[1,128], index: 3, kind: input, shape index: {}]   ;;  %s1319_s4 = inlined_call_operand.hbm [shape: f32[128,768], index: 4, kind: input, shape index: {}]   ;;  %s1320_s5 = inlined_call_operand.vmem [shape: f32[1,768], index: 5, kind: input, shape index: {}]   ;;  %s1321_s6 = inlined_call_operand.hbm [shape: f32[256,256], index: 6, kind: input, shape index: {}]   ;;  %s1322_s7 = inlined_call_operand.hbm [shape: f32[256,256], index: 7, kind: input, shape index: {}]   ;;  %s1323_s8 = inlined_call_operand.vmem [shape: f32[1,256], index: 8, kind: input, shape index: {}]   ;;  %s1324_s9 = inlined_call_operand.hbm [shape: f32[8,128], index: 9, kind: output, shape index: {}]  }
   0x1   :  { %15 = vsyncpa [#allocation6], 0 }
   0x2   :  { %16 = vsyncpa [#allocation9], 0 }
   0x3   :  { %17 = vsyncpa [#allocation12], 0 }
   0x4   :  { %18 = vsyncpa [#allocation4], 0  ;;  %s1173_s30 = smov [#allocation5]  }
   0x5   :  { %s34_s10 = sshll.u32 %s1173_s30, 4  ;;  %s35_s10 = int_to_ptr.vmem [resolvable:$true] %s34_s10 }
   0x6   :  { %s1031_s11 = scalar_lea.vmem %s35_s10, 8192  ;;  %p1036_p1 = scmp.lt.s32.totalorder %s35_s10, %s35_s10 }
   0x7   :  { %p1032_p0 = scmp.ne.s32.totalorder %s35_s10, %s1031_s11  ;;  %p1037_p2 = scmp.lt.s32.totalorder %s1031_s11, %s1031_s11 }
   0x9   :  { %p1038_p3 = por %p1037_p2, %p1036_p1 }
   0xb   :  { %p1039_p4 = pnand %p1038_p3, %p1032_p0 }
   0xd   :  { %1042 = shalt.err (!%p1039_p4)
}
   0xe   :  { %s1174_s12 = smov 256   ;;  %s1175_s13 = smov 16  }
   0xf   :  { %40 = dma.hbm_to_vmem [thread:$0]  %s1316_s1, 8192, %s35_s10, [#allocation6], %s1174_s12, %s1174_s12, %s1175_s13  }
  0x10   :  { %s1176_s16 = smov [#allocation8]  }
  0x11   :  { %s58_s17 = sshll.u32 %s1176_s16, 4  ;;  %s59_s17 = int_to_ptr.vmem [resolvable:$true] %s58_s17 }
  0x12   :  { %s1051_s18 = scalar_lea.vmem %s59_s17, 12288  ;;  %p1056_p6 = scmp.lt.s32.totalorder %s59_s17, %s59_s17 }
  0x13   :  { %p1052_p5 = scmp.ne.s32.totalorder %s59_s17, %s1051_s18  ;;  %p1057_p7 = scmp.lt.s32.totalorder %s1051_s18, %s1051_s18 }
  0x15   :  { %p1058_p8 = por %p1057_p7, %p1056_p6 }
  0x17   :  { %p1059_p9 = pnand %p1058_p8, %p1052_p5 }
  0x19   :  { %1062 = shalt.err (!%p1059_p9)
}
  0x1a   :  { %s1177_s19 = smov 768   ;;  %s1178_s20 = smov 48  }
  0x1b   :  { %64 = dma.hbm_to_vmem [thread:$0]  %s1319_s4, 12288, %s59_s17, [#allocation9], %s1177_s19, %s1177_s19, %s1178_s20  }
  0x1c   :  { %s1179_s23 = smov [#allocation2]   ;;  %s1180_s25 = smov [#allocation7]  }
  0x1d   :  { %s25_s24 = sshll.u32 %s1179_s23, 4  ;;  %s49_s1 = sshll.u32 %s1180_s25, 4  ;;  %s26_s24 = int_to_ptr.vmem [resolvable:$true] %s25_s24  ;;  %s50_s1 = int_to_ptr.vmem [resolvable:$true] %s49_s1 }
  0x1e   :  { %s1071_s26 = scalar_lea.vmem %s26_s24, 128  ;;  %p1076_p11 = scmp.lt.s32.totalorder %s26_s24, %s26_s24 }
  0x1f   :  { %p1072_p10 = scmp.ne.s32.totalorder %s26_s24, %s1071_s26  ;;  %p1077_p12 = scmp.lt.s32.totalorder %s1071_s26, %s1071_s26 }
  0x21   :  { %p1078_p13 = por %p1077_p12, %p1076_p11 }
  0x23   :  { %p1079_p0 = pnand %p1078_p13, %p1072_p10 }
  0x25   :  { %1082 = shalt.err (!%p1079_p0)
}
  0x26   :  { %28 = dma.hbm_to_vmem [thread:$0]  %s1315_s0, 128, %s26_s24, [#allocation3]  }
  0x27   :  { %s1091_s29 = scalar_lea.vmem %s50_s1, 16  ;;  %s1095_s4 = scalar_lea.vmem %s50_s1, 32 }
  0x28   :  { %p1092_p1 = scmp.ne.s32.totalorder %s50_s1, %s1091_s29  ;;  %p1096_p2 = scmp.lt.s32.totalorder %s50_s1, %s50_s1 }
  0x29   :  { %p1097_p3 = scmp.lt.s32.totalorder %s1095_s4, %s1091_s29 }
  0x2b   :  { %p1098_p4 = por %p1097_p3, %p1096_p2 }
  0x2d   :  { %p1099_p5 = pnand %p1098_p4, %p1092_p1 }
  0x2f   :  { %1102 = shalt.err (!%p1099_p5)
}
  0x30   :  { %52 = dma.hbm_to_vmem [thread:$0]  %s1318_s3, 16, %s50_s1, [#allocation6]  }
  0x31   :  { %s1181_s11 = smov [#allocation10]   ;;  %s1182_s15 = smov [#allocation11]  }
  0x32   :  { %s72_s14 = sshll.u32 %s1181_s11, 4  ;;  %s84_s16 = sshll.u32 %s1182_s15, 4  ;;  %s73_s14 = int_to_ptr.vmem [resolvable:$true] %s72_s14  ;;  %s85_s16 = int_to_ptr.vmem [resolvable:$true] %s84_s16 }
  0x33   :  { %s1111_s17 = scalar_lea.vmem %s73_s14, 8192  ;;  %p1116_p7 = scmp.lt.s32.totalorder %s73_s14, %s73_s14 }
  0x34   :  { %p1112_p6 = scmp.ne.s32.totalorder %s73_s14, %s1111_s17  ;;  %p1117_p8 = scmp.lt.s32.totalorder %s1111_s17, %s1111_s17 }
  0x36   :  { %p1118_p9 = por %p1117_p8, %p1116_p7 }
  0x38   :  { %p1119_p10 = pnand %p1118_p9, %p1112_p6 }
  0x3a   :  { %1122 = shalt.err (!%p1119_p10)
}
  0x3b   :  { %78 = dma.hbm_to_vmem [thread:$0]  %s1321_s6, 8192, %s73_s14, [#allocation9], %s1174_s12, %s1174_s12, %s1175_s13  }
  0x3c   :  { %s1131_s3 = scalar_lea.vmem %s85_s16, 8192  ;;  %p1136_p12 = scmp.lt.s32.totalorder %s85_s16, %s85_s16 }
  0x3d   :  { %p1132_p11 = scmp.ne.s32.totalorder %s85_s16, %s1131_s3  ;;  %p1137_p13 = scmp.lt.s32.totalorder %s1131_s3, %s1131_s3 }
  0x3f   :  { %p1138_p0 = por %p1137_p13, %p1136_p12 }
  0x41   :  { %p1139_p1 = pnand %p1138_p0, %p1132_p11 }
  0x43   :  { %1142 = shalt.err (!%p1139_p1)
}
  0x44   :  { %90 = dma.hbm_to_vmem [thread:$0]  %s1322_s7, 8192, %s85_s16, [#allocation12], %s1174_s12, %s1174_s12, %s1175_s13  }
  0x45   :  { %1163 = dma.done.wait [#allocation3], 128  }
  0x46   :  { %1164 = vsyncadd [#allocation3], 4294967168 }
  0x47   :  { %1165 = dma.done.wait [#allocation6], 8208  }
  0x48   :  { %1166 = vsyncadd [#allocation6], 4294959088 }
  0x49   :  { %1167 = dma.done.wait [#allocation9], 20480  }
  0x4a   :  { %1168 = vsyncadd [#allocation9], 4294946816 }
  0x4b   :  { %1169 = dma.done.wait [#allocation12], 8192  }
  0x4c   :  { %1170 = vsyncadd [#allocation12], 4294959104  ;;  %v144_v0 = vld [vmem:[#allocation5 + $0xf8] sm:$0xff]  ;;  %v143_v1 = vld [vmem:[#allocation5 + $0xf0] sm:$0xff] }
  0x4d   :  { %v142_v2 = vld [vmem:[#allocation5 + $0xe8] sm:$0xff]  ;;  %177 = vmatprep.subr.mxu0 %v144_v0  ;;  %v141_v3 = vld [vmem:[#allocation5 + $0xe0] sm:$0xff]  ;;  %v140_v4 = vld [vmem:[#allocation5 + $0xd8] sm:$0xff] }
  0x4e   :  { %178 = vmatpush1.msra.mxu0 %v143_v1  ;;  %v139_v5 = vld [vmem:[#allocation5 + $0xd0] sm:$0xff]  ;;  %v138_v6 = vld [vmem:[#allocation5 + $0xc8] sm:$0xff]  ;;  %v137_v7 = vld [vmem:[#allocation5 + $0xc0] sm:$0xff] }
  0x4f   :  { %179 = vmatprep.subr.mxu0 %v142_v2  ;;  %v136_v8 = vld [vmem:[#allocation5 + $0xb8] sm:$0xff]  ;;  %v135_v9 = vld [vmem:[#allocation5 + $0xb0] sm:$0xff]  ;;  %v134_v10 = vld [vmem:[#allocation5 + $0xa8] sm:$0xff] }
  0x50   :  { %180 = vmatpush1.msra.mxu0 %v141_v3  ;;  %v133_v11 = vld [vmem:[#allocation5 + $0xa0] sm:$0xff]  ;;  %v132_v12 = vld [vmem:[#allocation5 + $0x98] sm:$0xff]  ;;  %v131_v13 = vld [vmem:[#allocation5 + $0x90] sm:$0xff] }
  0x51   :  { %181 = vmatprep.subr.mxu0 %v140_v4  ;;  %v130_v14 = vld [vmem:[#allocation5 + $0x88] sm:$0xff]  ;;  %v129_v15 = vld [vmem:[#allocation5 + $0x80] sm:$0xff]  ;;  %v128_v16 = vld [vmem:[#allocation5 + $0x78] sm:$0xff] }
  0x52   :  { %182 = vmatpush1.msra.mxu0 %v139_v5  ;;  %v127_v17 = vld [vmem:[#allocation5 + $0x70] sm:$0xff]  ;;  %v126_v18 = vld [vmem:[#allocation5 + $0x68] sm:$0xff]  ;;  %v125_v19 = vld [vmem:[#allocation5 + $0x60] sm:$0xff] }
  0x53   :  { %183 = vmatprep.subr.mxu0 %v138_v6  ;;  %v124_v20 = vld [vmem:[#allocation5 + $0x58] sm:$0xff]  ;;  %v123_v21 = vld [vmem:[#allocation5 + $0x50] sm:$0xff]  ;;  %v122_v22 = vld [vmem:[#allocation5 + $0x48] sm:$0xff] }
  0x54   :  { %184 = vmatpush1.msra.mxu0 %v137_v7  ;;  %v121_v23 = vld [vmem:[#allocation5 + $0x40] sm:$0xff]  ;;  %v1263_v24 = vld [vmem:[#allocation2] sm:$0xff]  ;;  %v356_v29 = vld [vmem:[#allocation8 + $0x2a8] sm:$0xff] }
  0x55   :  { %185 = vmatprep.subr.mxu0 %v136_v8  ;;  %v362_v25 = vld [vmem:[#allocation8 + $0x2d8] sm:$0xff]  ;;  %v112_v27 = vmul.f32 %v1263_v24, %v1263_v24  ;;  %v361_v28 = vld [vmem:[#allocation8 + $0x2d0] sm:$0xff]  ;;  %v355_v31 = vld [vmem:[#allocation8 + $0x2a0] sm:$0xff] }
  0x56   :  { %186 = vmatpush1.msra.mxu0 %v135_v9  ;;  %v120_v26 = vld [vmem:[#allocation5 + $0x38] sm:$0xff]  ;;  %399 = vmatprep.subr.mxu1 %v362_v25  ;;  %v119_v30 = vld [vmem:[#allocation5 + $0x30] sm:$0xff]  ;;  %v118_v32 = vld [vmem:[#allocation5 + $0x28] sm:$0xff] }
  0x57   :  { %187 = vmatprep.subr.mxu0 %v134_v10  ;;  %400 = vmatpush1.msra.mxu1 %v361_v28  ;;  %v117_v33 = vld [vmem:[#allocation5 + $0x20] sm:$0xff]  ;;  %v116_v34 = vld [vmem:[#allocation5 + $0x18] sm:$0xff]  ;;  %v115_v35 = vld [vmem:[#allocation5 + $0x10] sm:$0xff] }
  0x58   :  { %188 = vmatpush1.msra.mxu0 %v133_v11  ;;  %241 = vmatprep.mubr.f32.mxu0 %v112_v27  ;;  %v114_v36 = vld [vmem:[#allocation5 + $0x8] sm:$0xff]  ;;  %v113_v37 = vld [vmem:[#allocation5] sm:$0xff]  ;;  %v176_v38 = vld [vmem:[#allocation5 + $0x1f8] sm:$0xff] }
  0x59   :  { %189 = vmatprep.subr.mxu0 %v132_v12  ;;  %401 = vmatprep.subr.mxu1 %v356_v29  ;;  %v175_v39 = vld [vmem:[#allocation5 + $0x1f0] sm:$0xff]  ;;  %v174_v40 = vld [vmem:[#allocation5 + $0x1e8] sm:$0xff]  ;;  %v173_v41 = vld [vmem:[#allocation5 + $0x1e0] sm:$0xff] }
  0x5a   :  { %190 = vmatpush1.msra.mxu0 %v131_v13  ;;  %402 = vmatpush1.msra.mxu1 %v355_v31  ;;  %v172_v42 = vld [vmem:[#allocation5 + $0x1d8] sm:$0xff]  ;;  %v171_v43 = vld [vmem:[#allocation5 + $0x1d0] sm:$0xff]  ;;  %v170_v44 = vld [vmem:[#allocation5 + $0x1c8] sm:$0xff] }
  0x5b   :  { %191 = vmatprep.subr.mxu0 %v130_v14  ;;  %v169_v45 = vld [vmem:[#allocation5 + $0x1c0] sm:$0xff]  ;;  %v168_v46 = vld [vmem:[#allocation5 + $0x1b8] sm:$0xff]  ;;  %v167_v47 = vld [vmem:[#allocation5 + $0x1b0] sm:$0xff] }
  0x5c   :  { %192 = vmatpush1.msra.mxu0 %v129_v15  ;;  %v166_v48 = vld [vmem:[#allocation5 + $0x1a8] sm:$0xff]  ;;  %v165_v49 = vld [vmem:[#allocation5 + $0x1a0] sm:$0xff]  ;;  %v164_v50 = vld [vmem:[#allocation5 + $0x198] sm:$0xff] }
  0x5d   :  { %193 = vmatprep.subr.mxu0 %v128_v16  ;;  %v163_v51 = vld [vmem:[#allocation5 + $0x190] sm:$0xff]  ;;  %v162_v52 = vld [vmem:[#allocation5 + $0x188] sm:$0xff]  ;;  %v161_v53 = vld [vmem:[#allocation5 + $0x180] sm:$0xff] }
  0x5e   :  { %194 = vmatpush1.msra.mxu0 %v127_v17  ;;  %v160_v54 = vld [vmem:[#allocation5 + $0x178] sm:$0xff]  ;;  %v159_v55 = vld [vmem:[#allocation5 + $0x170] sm:$0xff]  ;;  %v158_v56 = vld [vmem:[#allocation5 + $0x168] sm:$0xff] }
  0x5f   :  { %195 = vmatprep.subr.mxu0 %v126_v18  ;;  %v157_v57 = vld [vmem:[#allocation5 + $0x160] sm:$0xff]  ;;  %v156_v58 = vld [vmem:[#allocation5 + $0x158] sm:$0xff]  ;;  %v155_v59 = vld [vmem:[#allocation5 + $0x150] sm:$0xff] }
  0x60   :  { %196 = vmatpush1.msra.mxu0 %v125_v19  ;;  %v154_v60 = vld [vmem:[#allocation5 + $0x148] sm:$0xff]  ;;  %v153_v61 = vld [vmem:[#allocation5 + $0x140] sm:$0xff]  ;;  %v152_v62 = vld [vmem:[#allocation5 + $0x138] sm:$0xff] }
  0x61   :  { %197 = vmatprep.subr.mxu0 %v124_v20  ;;  %v151_v63 = vld [vmem:[#allocation5 + $0x130] sm:$0xff]  ;;  %v150_v0 = vld [vmem:[#allocation5 + $0x128] sm:$0xff]  ;;  %v149_v1 = vld [vmem:[#allocation5 + $0x120] sm:$0xff] }
  0x62   :  { %198 = vmatpush1.msra.mxu0 %v123_v21  ;;  %v148_v2 = vld [vmem:[#allocation5 + $0x118] sm:$0xff]  ;;  %v147_v3 = vld [vmem:[#allocation5 + $0x110] sm:$0xff]  ;;  %v146_v4 = vld [vmem:[#allocation5 + $0x108] sm:$0xff] }
  0x63   :  { %199 = vmatprep.subr.mxu0 %v122_v22  ;;  %v145_v5 = vld [vmem:[#allocation5 + $0x100] sm:$0xff]  ;;  %v365_v7 = vld [vmem:[#allocation8 + $0x2f0] sm:$0xff]  ;;  %v360_v8 = vld [vmem:[#allocation8 + $0x2c8] sm:$0xff] }
  0x64   :  { %200 = vmatpush1.msra.mxu0 %v121_v23  ;;  %v366_v6 = vld [vmem:[#allocation8 + $0x2f8] sm:$0xff]  ;;  %v359_v10 = vld [vmem:[#allocation8 + $0x2c0] sm:$0xff]  ;;  %v349_v11 = vld [vmem:[#allocation8 + $0x270] sm:$0xff] }
  0x65   :  { %201 = vmatprep.subr.mxu0 %v120_v26  ;;  %v350_v9 = vld [vmem:[#allocation8 + $0x278] sm:$0xff]  ;;  %v344_v13 = vld [vmem:[#allocation8 + $0x248] sm:$0xff]  ;;  %v353_v14 = vld [vmem:[#allocation8 + $0x290] sm:$0xff] }
  0x66   :  { %202 = vmatpush1.msra.mxu0 %v119_v30  ;;  %403 = vmatprep.subr.mxu1 %v350_v9  ;;  %v354_v12 = vld [vmem:[#allocation8 + $0x298] sm:$0xff]  ;;  %v343_v15 = vld [vmem:[#allocation8 + $0x240] sm:$0xff]  ;;  %v348_v16 = vld [vmem:[#allocation8 + $0x268] sm:$0xff] }
  0x67   :  { %203 = vmatprep.subr.mxu0 %v118_v32  ;;  %404 = vmatpush1.msra.mxu1 %v349_v11  ;;  %v338_v17 = vld [vmem:[#allocation8 + $0x218] sm:$0xff]  ;;  %v347_v18 = vld [vmem:[#allocation8 + $0x260] sm:$0xff]  ;;  %v337_v19 = vld [vmem:[#allocation8 + $0x210] sm:$0xff] }
  0x68   :  { %204 = vmatpush1.msra.mxu0 %v117_v33  ;;  %405 = vmatprep.subr.mxu1 %v344_v13  ;;  %v342_v20 = vld [vmem:[#allocation8 + $0x238] sm:$0xff]  ;;  %v332_v21 = vld [vmem:[#allocation8 + $0x1e8] sm:$0xff]  ;;  %v341_v22 = vld [vmem:[#allocation8 + $0x230] sm:$0xff] }
  0x69   :  { %205 = vmatprep.subr.mxu0 %v116_v34  ;;  %406 = vmatpush1.msra.mxu1 %v343_v15  ;;  %v331_v23 = vld [vmem:[#allocation8 + $0x1e0] sm:$0xff]  ;;  %v336_v25 = vld [vmem:[#allocation8 + $0x208] sm:$0xff]  ;;  %v326_v26 = vld [vmem:[#allocation8 + $0x1b8] sm:$0xff] }
  0x6a   :  { %206 = vmatpush1.msra.mxu0 %v115_v35  ;;  %407 = vmatprep.subr.mxu1 %v338_v17  ;;  %v335_v27 = vld [vmem:[#allocation8 + $0x200] sm:$0xff]  ;;  %v325_v28 = vld [vmem:[#allocation8 + $0x1b0] sm:$0xff]  ;;  %v330_v29 = vld [vmem:[#allocation8 + $0x1d8] sm:$0xff] }
  0x6b   :  { %207 = vmatprep.subr.mxu0 %v114_v36  ;;  %408 = vmatpush1.msra.mxu1 %v337_v19  ;;  %v320_v30 = vld [vmem:[#allocation8 + $0x188] sm:$0xff]  ;;  %v329_v31 = vld [vmem:[#allocation8 + $0x1d0] sm:$0xff]  ;;  %v319_v32 = vld [vmem:[#allocation8 + $0x180] sm:$0xff] }
  0x6c   :  { %208 = vmatpush1.msra.mxu0 %v113_v37  ;;  %409 = vmatprep.subr.mxu1 %v332_v21  ;;  %v324_v33 = vld [vmem:[#allocation8 + $0x1a8] sm:$0xff]  ;;  %v314_v34 = vld [vmem:[#allocation8 + $0x158] sm:$0xff]  ;;  %v323_v35 = vld [vmem:[#allocation8 + $0x1a0] sm:$0xff] }
  0x6d   :  { %209 = vmatprep.subr.mxu0 %v176_v38  ;;  %410 = vmatpush1.msra.mxu1 %v331_v23  ;;  %v313_v36 = vld [vmem:[#allocation8 + $0x150] sm:$0xff]  ;;  %v318_v37 = vld [vmem:[#allocation8 + $0x178] sm:$0xff]  ;;  %v308_v38 = vld [vmem:[#allocation8 + $0x128] sm:$0xff] }
  0x6e   :  { %210 = vmatpush2.msra.mxu0 %v175_v39  ;;  %411 = vmatprep.subr.mxu1 %v326_v26  ;;  %v317_v39 = vld [vmem:[#allocation8 + $0x170] sm:$0xff]  ;;  %v992_v15 = vld [vmem:[#allocation7] ss:$0 sm:$0xff]  ;;  %v352_v21 = vld [vmem:[#allocation8 + $0x288] sm:$0xff] }
  0x6f   :  { %211 = vmatprep.subr.mxu0 %v174_v40  ;;  %412 = vmatpush1.msra.mxu1 %v325_v28  ;;  %v307_v40 = vld [vmem:[#allocation8 + $0x120] sm:$0xff]  ;;  %v991_v13 = vld [vmem:[%s1317_s2] ss:$0 sm:$0xff]  ;;  %v358_v19 = vld [vmem:[#allocation8 + $0x2b8] sm:$0xff] }
  0x70   :  { %212 = vmatpush2.msra.mxu0 %v173_v41  ;;  %413 = vmatprep.subr.mxu1 %v320_v30  ;;  %v312_v41 = vld [vmem:[#allocation8 + $0x148] sm:$0xff]  ;;  %v345_v23 = vld [vmem:[#allocation8 + $0x250] sm:$0xff]  ;;  %v339_v26 = vld [vmem:[#allocation8 + $0x220] sm:$0xff] }
  0x71   :  { %213 = vmatprep.subr.mxu0 %v172_v42  ;;  %414 = vmatpush1.msra.mxu1 %v319_v32  ;;  %v302_v42 = vld [vmem:[#allocation8 + $0xf8] sm:$0xff]  ;;  %v333_v28 = vld [vmem:[#allocation8 + $0x1f0] sm:$0xff]  ;;  %v327_v30 = vld [vmem:[#allocation8 + $0x1c0] sm:$0xff] }
  0x72   :  { %214 = vmatpush2.msra.mxu0 %v171_v43  ;;  %415 = vmatprep.subr.mxu1 %v314_v34  ;;  %v311_v43 = vld [vmem:[#allocation8 + $0x140] sm:$0xff]  ;;  %v321_v32 = vld [vmem:[#allocation8 + $0x190] sm:$0xff] }
  0x73   :  { %215 = vmatprep.subr.mxu0 %v170_v44  ;;  %416 = vmatpush1.msra.mxu1 %v313_v36  ;;  %v301_v44 = vld [vmem:[#allocation8 + $0xf0] sm:$0xff]  ;;  %v315_v34 = vld [vmem:[#allocation8 + $0x160] sm:$0xff] }
  0x74   :  { %216 = vmatpush2.msra.mxu0 %v169_v45  ;;  %417 = vmatprep.subr.mxu1 %v308_v38  ;;  %v306_v45 = vld [vmem:[#allocation8 + $0x118] sm:$0xff]  ;;  %v309_v36 = vld [vmem:[#allocation8 + $0x130] sm:$0xff]  ;;  %v303_v38 = vld [vmem:[#allocation8 + $0x100] sm:$0xff] }
  0x75   :  { %217 = vmatprep.subr.mxu0 %v168_v46  ;;  %418 = vmatpush1.msra.mxu1 %v307_v40  ;;  %v296_v46 = vld [vmem:[#allocation8 + $0xc8] sm:$0xff]  ;;  %v297_v40 = vld [vmem:[#allocation8 + $0xd0] sm:$0xff] }
  0x76   :  { %218 = vmatpush2.msra.mxu0 %v167_v47  ;;  %v305_v47 = vld [vmem:[#allocation8 + $0x110] sm:$0xff]  ;;  %419 = vmatprep.subr.mxu1 %v302_v42  ;;  %v291_v42 = vld [vmem:[#allocation8 + $0xa0] sm:$0xff] }
  0x77   :  { %219 = vmatprep.subr.mxu0 %v166_v48  ;;  %v295_v48 = vld [vmem:[#allocation8 + $0xc0] sm:$0xff]  ;;  %420 = vmatpush1.msra.mxu1 %v301_v44  ;;  %v285_v44 = vld [vmem:[#allocation8 + $0x70] sm:$0xff] }
  0x78   :  { %220 = vmatpush2.msra.mxu0 %v165_v49  ;;  %v300_v49 = vld [vmem:[#allocation8 + $0xe8] sm:$0xff]  ;;  %421 = vmatprep.subr.mxu1 %v296_v46  ;;  %v279_v46 = vld [vmem:[#allocation8 + $0x40] sm:$0xff] }
  0x79   :  { %221 = vmatprep.subr.mxu0 %v164_v50  ;;  %v290_v50 = vld [vmem:[#allocation8 + $0x98] sm:$0xff]  ;;  %422 = vmatpush1.msra.mxu1 %v295_v48  ;;  %v273_v48 = vld [vmem:[#allocation8 + $0x10] sm:$0xff] }
  0x7a   :  { %222 = vmatpush2.msra.mxu0 %v163_v51  ;;  %v299_v51 = vld [vmem:[#allocation8 + $0xe0] sm:$0xff]  ;;  %423 = vmatprep.subr.mxu1 %v290_v50  ;;  %v673_v50 = vld [vmem:[#allocation10 + $0xf0] sm:$0xff] }
  0x7b   :  { %223 = vmatprep.subr.mxu0 %v162_v52  ;;  %v289_v52 = vld [vmem:[#allocation8 + $0x90] sm:$0xff] }
  0x7c   :  { %224 = vmatpush2.msra.mxu0 %v161_v53  ;;  %v294_v53 = vld [vmem:[#allocation8 + $0xb8] sm:$0xff]  ;;  %424 = vmatpush1.msra.mxu1 %v289_v52  ;;  %v671_v52 = vld [vmem:[#allocation10 + $0xe0] sm:$0xff] }
  0x7d   :  { %225 = vmatprep.subr.mxu0 %v160_v54  ;;  %v284_v54 = vld [vmem:[#allocation8 + $0x68] sm:$0xff] }
  0x7e   :  { %226 = vmatpush2.msra.mxu0 %v159_v55  ;;  %v293_v55 = vld [vmem:[#allocation8 + $0xb0] sm:$0xff]  ;;  %425 = vmatprep.subr.mxu1 %v284_v54 }
  0x7f   :  { %227 = vmatprep.subr.mxu0 %v158_v56  ;;  %v283_v56 = vld [vmem:[#allocation8 + $0x60] sm:$0xff]  ;;  %v669_v54 = vld [vmem:[#allocation10 + $0xd0] sm:$0xff] }
  0x80   :  { %228 = vmatpush2.msra.mxu0 %v157_v57  ;;  %v288_v57 = vld [vmem:[#allocation8 + $0x88] sm:$0xff]  ;;  %426 = vmatpush1.msra.mxu1 %v283_v56  ;;  %v667_v56 = vld [vmem:[#allocation10 + $0xc0] sm:$0xff] }
  0x81   :  { %229 = vmatprep.subr.mxu0 %v156_v58  ;;  %v278_v58 = vld [vmem:[#allocation8 + $0x38] sm:$0xff] }
  0x82   :  { %230 = vmatpush2.msra.mxu0 %v155_v59  ;;  %v287_v59 = vld [vmem:[#allocation8 + $0x80] sm:$0xff]  ;;  %427 = vmatprep.subr.mxu1 %v278_v58  ;;  %v665_v58 = vld [vmem:[#allocation10 + $0xb0] sm:$0xff] }
  0x83   :  { %231 = vmatprep.subr.mxu0 %v154_v60  ;;  %v277_v60 = vld [vmem:[#allocation8 + $0x30] sm:$0xff] }
  0x84   :  { %232 = vmatpush2.msra.mxu0 %v153_v61  ;;  %v282_v61 = vld [vmem:[#allocation8 + $0x58] sm:$0xff]  ;;  %428 = vmatpush1.msra.mxu1 %v277_v60  ;;  %v663_v60 = vld [vmem:[#allocation10 + $0xa0] sm:$0xff] }
  0x85   :  { %233 = vmatprep.subr.mxu0 %v152_v62  ;;  %v272_v62 = vld [vmem:[#allocation8 + $0x8] sm:$0xff] }
  0x86   :  { %234 = vmatpush2.msra.mxu0 %v151_v63  ;;  %v281_v63 = vld [vmem:[#allocation8 + $0x50] sm:$0xff]  ;;  %429 = vmatprep.subr.mxu1 %v272_v62 }
  0x87   :  { %235 = vmatprep.subr.mxu0 %v150_v0  ;;  %v271_v0 = vld [vmem:[#allocation8] sm:$0xff]  ;;  %v661_v62 = vld [vmem:[#allocation10 + $0x90] sm:$0xff] }
  0x88   :  { %236 = vmatpush2.msra.mxu0 %v149_v1  ;;  %v276_v1 = vld [vmem:[#allocation8 + $0x28] sm:$0xff]  ;;  %430 = vmatpush1.msra.mxu1 %v271_v0  ;;  %v659_v0 = vld [vmem:[#allocation10 + $0x80] sm:$0xff] }
  0x89   :  { %237 = vmatprep.subr.mxu0 %v148_v2  ;;  %v364_v2 = vld [vmem:[#allocation8 + $0x2e8] sm:$0xff] }
  0x8a   :  { %238 = vmatpush2.msra.mxu0 %v147_v3  ;;  %v275_v3 = vld [vmem:[#allocation8 + $0x20] sm:$0xff]  ;;  %470 = vmatprep.subr.mxu1 %v364_v2  ;;  %v657_v2 = vld [vmem:[#allocation10 + $0x70] sm:$0xff] }
  0x8b   :  { %239 = vmatprep.subr.mxu0 %v146_v4  ;;  %v1183_v4 = vmov 0.0  }
  0x8c   :  { %240 = vmatpush2.msra.mxu0 %v145_v5  ;;  %463 = vmatprep.mubr.f32.mxu1 %v1183_v4 }
  0x8d   :  { %242 = vmatmul.mubr.f32.vlgmr.msra.gmra.mxu0 %v1263_v24  ;;  %541 = vmatprep.subr.mxu0 %v366_v6 }
  0x8e   :  { %542 = vmatpush1.msra.mxu0 %v365_v7  ;;  %605 = vmatprep.mubr.f32.mxu0 %v1183_v4 }
  0x8f   :  { %543 = vmatprep.subr.mxu0 %v360_v8 }
  0x90   :  { %544 = vmatpush1.msra.mxu0 %v359_v10 }
  0x91   :  { %545 = vmatprep.subr.mxu0 %v354_v12 }
  0x92   :  { %546 = vmatpush1.msra.mxu0 %v353_v14 }
  0x93   :  { %547 = vmatprep.subr.mxu0 %v348_v16 }
  0x94   :  { %548 = vmatpush1.msra.mxu0 %v347_v18  ;;  %v363_v18 = vld [vmem:[#allocation8 + $0x2e0] sm:$0xff] }
  0x95   :  { %549 = vmatprep.subr.mxu0 %v342_v20  ;;  %v357_v20 = vld [vmem:[#allocation8 + $0x2b0] sm:$0xff] }
  0x96   :  { %550 = vmatpush1.msra.mxu0 %v341_v22  ;;  %v346_v22 = vld [vmem:[#allocation8 + $0x258] sm:$0xff] }
  0x97   :  { %551 = vmatprep.subr.mxu0 %v336_v25  ;;  %v340_v25 = vld [vmem:[#allocation8 + $0x228] sm:$0xff] }
  0x98   :  { %552 = vmatpush1.msra.mxu0 %v335_v27  ;;  %v334_v27 = vld [vmem:[#allocation8 + $0x1f8] sm:$0xff] }
  0x99   :  { %553 = vmatprep.subr.mxu0 %v330_v29  ;;  %v328_v29 = vld [vmem:[#allocation8 + $0x1c8] sm:$0xff] }
  0x9a   :  { %554 = vmatpush1.msra.mxu0 %v329_v31  ;;  %v322_v31 = vld [vmem:[#allocation8 + $0x198] sm:$0xff] }
  0x9b   :  { %555 = vmatprep.subr.mxu0 %v324_v33  ;;  %v316_v33 = vld [vmem:[#allocation8 + $0x168] sm:$0xff] }
  0x9c   :  { %556 = vmatpush1.msra.mxu0 %v323_v35  ;;  %v310_v35 = vld [vmem:[#allocation8 + $0x138] sm:$0xff] }
  0x9d   :  { %557 = vmatprep.subr.mxu0 %v318_v37  ;;  %v304_v37 = vld [vmem:[#allocation8 + $0x108] sm:$0xff] }
  0x9e   :  { %558 = vmatpush1.msra.mxu0 %v317_v39  ;;  %v298_v39 = vld [vmem:[#allocation8 + $0xd8] sm:$0xff] }
  0x9f   :  { %559 = vmatprep.subr.mxu0 %v312_v41  ;;  %v292_v41 = vld [vmem:[#allocation8 + $0xa8] sm:$0xff] }
  0xa0   :  { %560 = vmatpush1.msra.mxu0 %v311_v43  ;;  %v286_v43 = vld [vmem:[#allocation8 + $0x78] sm:$0xff] }
  0xa1   :  { %561 = vmatprep.subr.mxu0 %v306_v45  ;;  %v280_v45 = vld [vmem:[#allocation8 + $0x48] sm:$0xff] }
  0xa2   :  { %562 = vmatpush1.msra.mxu0 %v305_v47  ;;  %v274_v47 = vld [vmem:[#allocation8 + $0x18] sm:$0xff] }
  0xa3   :  { %563 = vmatprep.subr.mxu0 %v300_v49  ;;  %v674_v49 = vld [vmem:[#allocation10 + $0xf8] sm:$0xff] }
  0xa4   :  { %564 = vmatpush1.msra.mxu0 %v299_v51  ;;  %v672_v51 = vld [vmem:[#allocation10 + $0xe8] sm:$0xff] }
  0xa5   :  { %565 = vmatprep.subr.mxu0 %v294_v53  ;;  %v670_v53 = vld [vmem:[#allocation10 + $0xd8] sm:$0xff] }
  0xa6   :  { %566 = vmatpush1.msra.mxu0 %v293_v55  ;;  %v668_v55 = vld [vmem:[#allocation10 + $0xc8] sm:$0xff] }
  0xa7   :  { %567 = vmatprep.subr.mxu0 %v288_v57  ;;  %v666_v57 = vld [vmem:[#allocation10 + $0xb8] sm:$0xff] }
  0xa8   :  { %568 = vmatpush1.msra.mxu0 %v287_v59  ;;  %v664_v59 = vld [vmem:[#allocation10 + $0xa8] sm:$0xff] }
  0xa9   :  { %569 = vmatprep.subr.mxu0 %v282_v61  ;;  %v662_v61 = vld [vmem:[#allocation10 + $0x98] sm:$0xff] }
  0xaa   :  { %570 = vmatpush1.msra.mxu0 %v281_v63  ;;  %v660_v63 = vld [vmem:[#allocation10 + $0x88] sm:$0xff] }
  0xab   :  { %571 = vmatprep.subr.mxu0 %v276_v1  ;;  %v658_v1 = vld [vmem:[#allocation10 + $0x78] sm:$0xff] }
  0xac   :  { %572 = vmatpush1.msra.mxu0 %v275_v3  ;;  %v656_v3 = vld [vmem:[#allocation10 + $0x68] sm:$0xff] }
 0x14d   :  { %v243_v5 = vpop.f32.mrf.mxu0 }
 0x14e   :  { %v248_v6 = vmul.f32 %v243_v5, %v243_v5  ;;  %v251_v11 = vsub.f32 %v1263_v24, %v243_v5  ;;  %v351_v24 = vld [vmem:[#allocation8 + $0x280] sm:$0xff]  ;;  %v654_v5 = vld [vmem:[#allocation10 + $0x58] sm:$0xff] }
 0x14f   :  { %v245_v7 = vpop.f32.mrf.mxu0 }
 0x150   :  { %v249_v8 = vsub.f32 %v245_v7, %v248_v6  ;;  %v653_v6 = vld [vmem:[#allocation10 + $0x50] sm:$0xff]  ;;  %v652_v7 = vld [vmem:[#allocation10 + $0x48] sm:$0xff] }
 0x152   :  { %v250_v9 = vmax.f32 %v249_v8, 0.0  ;;  %v651_v8 = vld [vmem:[#allocation10 + $0x40] sm:$0xff] }
 0x154   :  { %v252_v10 = vadd.f32 1e-05, %v250_v9  ;;  %v650_v9 = vld [vmem:[#allocation10 + $0x38] sm:$0xff] }
 0x156   :  { %1006 = vrsqrt.f32 %v252_v10  ;;  %v649_v10 = vld [vmem:[#allocation10 + $0x30] sm:$0xff] }
 0x163   :  { %v1007_v12 = vpop.eup %1006 }
 0x164   :  { %v254_v14 = vmul.f32 %v1007_v12, %v251_v11  ;;  %v648_v11 = vld [vmem:[#allocation10 + $0x28] sm:$0xff]  ;;  %v647_v12 = vld [vmem:[#allocation10 + $0x20] sm:$0xff] }
 0x166   :  { %v262_v16 = vmul.f32 %v991_v13, %v254_v14  ;;  %v646_v13 = vld [vmem:[#allocation10 + $0x18] sm:$0xff]  ;;  %v645_v14 = vld [vmem:[#allocation10 + $0x10] sm:$0xff] }
 0x168   :  { %v1272_v17 = vadd.f32 %v992_v15, %v262_v16  ;;  %v644_v15 = vld [vmem:[#allocation10 + $0x8] sm:$0xff]  ;;  %v643_v16 = vld [vmem:[#allocation10] sm:$0xff] }
 0x16a   :  { %464 = vmatmul.mubr.f32.vlgmr.msra.gmra.mxu1 %v1272_v17  ;;  %606 = vmatmul.mubr.f32.vlgmr.msra.gmra.mxu0 %v1272_v17 }
 0x16b   :  { %471 = vmatpush1.msra.mxu1 %v363_v18  ;;  %534 = vmatprep.mubr.f32.mxu1 %v1183_v4  ;;  %v655_v4 = vld [vmem:[#allocation10 + $0x60] sm:$0xff]  ;;  %v705_v18 = vld [vmem:[#allocation10 + $0x1f0] sm:$0xff] }
 0x16c   :  { %472 = vmatprep.subr.mxu1 %v358_v19  ;;  %v704_v19 = vld [vmem:[#allocation10 + $0x1e8] sm:$0xff] }
 0x16d   :  { %473 = vmatpush1.msra.mxu1 %v357_v20  ;;  %v703_v20 = vld [vmem:[#allocation10 + $0x1e0] sm:$0xff] }
 0x16e   :  { %474 = vmatprep.subr.mxu1 %v352_v21  ;;  %v702_v21 = vld [vmem:[#allocation10 + $0x1d8] sm:$0xff] }
 0x16f   :  { %475 = vmatpush1.msra.mxu1 %v351_v24  ;;  %v701_v24 = vld [vmem:[#allocation10 + $0x1d0] sm:$0xff] }
 0x170   :  { %476 = vmatprep.subr.mxu1 %v346_v22  ;;  %v700_v22 = vld [vmem:[#allocation10 + $0x1c8] sm:$0xff] }
 0x171   :  { %477 = vmatpush1.msra.mxu1 %v345_v23  ;;  %v699_v23 = vld [vmem:[#allocation10 + $0x1c0] sm:$0xff] }
 0x172   :  { %478 = vmatprep.subr.mxu1 %v340_v25  ;;  %v698_v25 = vld [vmem:[#allocation10 + $0x1b8] sm:$0xff] }
 0x173   :  { %479 = vmatpush1.msra.mxu1 %v339_v26  ;;  %v697_v26 = vld [vmem:[#allocation10 + $0x1b0] sm:$0xff] }
 0x174   :  { %480 = vmatprep.subr.mxu1 %v334_v27  ;;  %v696_v27 = vld [vmem:[#allocation10 + $0x1a8] sm:$0xff] }
 0x175   :  { %481 = vmatpush1.msra.mxu1 %v333_v28  ;;  %v695_v28 = vld [vmem:[#allocation10 + $0x1a0] sm:$0xff] }
 0x176   :  { %482 = vmatprep.subr.mxu1 %v328_v29  ;;  %v694_v29 = vld [vmem:[#allocation10 + $0x198] sm:$0xff] }
 0x177   :  { %483 = vmatpush1.msra.mxu1 %v327_v30  ;;  %v693_v30 = vld [vmem:[#allocation10 + $0x190] sm:$0xff] }
 0x178   :  { %484 = vmatprep.subr.mxu1 %v322_v31  ;;  %v692_v31 = vld [vmem:[#allocation10 + $0x188] sm:$0xff] }
 0x179   :  { %485 = vmatpush1.msra.mxu1 %v321_v32  ;;  %v691_v32 = vld [vmem:[#allocation10 + $0x180] sm:$0xff] }
 0x17a   :  { %486 = vmatprep.subr.mxu1 %v316_v33  ;;  %v690_v33 = vld [vmem:[#allocation10 + $0x178] sm:$0xff] }
 0x17b   :  { %487 = vmatpush1.msra.mxu1 %v315_v34  ;;  %v689_v34 = vld [vmem:[#allocation10 + $0x170] sm:$0xff] }
 0x17c   :  { %488 = vmatprep.subr.mxu1 %v310_v35  ;;  %v688_v35 = vld [vmem:[#allocation10 + $0x168] sm:$0xff] }
 0x17d   :  { %489 = vmatpush1.msra.mxu1 %v309_v36  ;;  %v687_v36 = vld [vmem:[#allocation10 + $0x160] sm:$0xff] }
 0x17e   :  { %490 = vmatprep.subr.mxu1 %v304_v37  ;;  %v686_v37 = vld [vmem:[#allocation10 + $0x158] sm:$0xff] }
 0x17f   :  { %491 = vmatpush1.msra.mxu1 %v303_v38  ;;  %v685_v38 = vld [vmem:[#allocation10 + $0x150] sm:$0xff] }
 0x180   :  { %492 = vmatprep.subr.mxu1 %v298_v39  ;;  %v684_v39 = vld [vmem:[#allocation10 + $0x148] sm:$0xff] }
 0x181   :  { %493 = vmatpush1.msra.mxu1 %v297_v40  ;;  %v683_v40 = vld [vmem:[#allocation10 + $0x140] sm:$0xff] }
 0x182   :  { %494 = vmatprep.subr.mxu1 %v292_v41  ;;  %v682_v41 = vld [vmem:[#allocation10 + $0x138] sm:$0xff] }
 0x183   :  { %495 = vmatpush1.msra.mxu1 %v291_v42  ;;  %v681_v42 = vld [vmem:[#allocation10 + $0x130] sm:$0xff] }
 0x184   :  { %496 = vmatprep.subr.mxu1 %v286_v43  ;;  %v680_v43 = vld [vmem:[#allocation10 + $0x128] sm:$0xff] }
 0x185   :  { %497 = vmatpush1.msra.mxu1 %v285_v44  ;;  %v679_v44 = vld [vmem:[#allocation10 + $0x120] sm:$0xff] }
 0x186   :  { %498 = vmatprep.subr.mxu1 %v280_v45  ;;  %v678_v45 = vld [vmem:[#allocation10 + $0x118] sm:$0xff] }
 0x187   :  { %499 = vmatpush1.msra.mxu1 %v279_v46  ;;  %v677_v46 = vld [vmem:[#allocation10 + $0x110] sm:$0xff] }
 0x188   :  { %500 = vmatprep.subr.mxu1 %v274_v47  ;;  %v676_v47 = vld [vmem:[#allocation10 + $0x108] sm:$0xff] }
 0x189   :  { %501 = vmatpush1.msra.mxu1 %v273_v48  ;;  %v675_v48 = vld [vmem:[#allocation10 + $0x100] sm:$0xff] }
 0x18a   :  { %535 = vmatmul.mubr.f32.vlgmr.msra.gmra.mxu1 %v1272_v17  ;;  %707 = vmatprep.subr.mxu1 %v674_v49  ;;  %v706_v17 = vld [vmem:[#allocation10 + $0x1f8] sm:$0xff] }
 0x18b   :  { %708 = vmatpush1.msra.mxu1 %v673_v50  ;;  %v825_v49 = vld [vmem:[#allocation11 + $0xf8] sm:$0xff]  ;;  %v824_v50 = vld [vmem:[#allocation11 + $0xf0] sm:$0xff] }
 0x18c   :  { %709 = vmatprep.subr.mxu1 %v672_v51  ;;  %v823_v51 = vld [vmem:[#allocation11 + $0xe8] sm:$0xff]  ;;  %870 = vmatprep.subr.mxu0 %v825_v49 }
 0x18d   :  { %710 = vmatpush1.msra.mxu1 %v671_v52  ;;  %v822_v52 = vld [vmem:[#allocation11 + $0xe0] sm:$0xff]  ;;  %871 = vmatpush1.msra.mxu0 %v824_v50 }
 0x18e   :  { %711 = vmatprep.subr.mxu1 %v670_v53  ;;  %v821_v53 = vld [vmem:[#allocation11 + $0xd8] sm:$0xff]  ;;  %872 = vmatprep.subr.mxu0 %v823_v51 }
 0x18f   :  { %712 = vmatpush1.msra.mxu1 %v669_v54  ;;  %v820_v54 = vld [vmem:[#allocation11 + $0xd0] sm:$0xff]  ;;  %873 = vmatpush1.msra.mxu0 %v822_v52 }
 0x190   :  { %713 = vmatprep.subr.mxu1 %v668_v55  ;;  %v819_v55 = vld [vmem:[#allocation11 + $0xc8] sm:$0xff]  ;;  %874 = vmatprep.subr.mxu0 %v821_v53  ;;  %v808_v53 = vld [vmem:[#allocation11 + $0x70] sm:$0xff] }
 0x191   :  { %714 = vmatpush1.msra.mxu1 %v667_v56  ;;  %v818_v56 = vld [vmem:[#allocation11 + $0xc0] sm:$0xff]  ;;  %875 = vmatpush1.msra.mxu0 %v820_v54  ;;  %v807_v54 = vld [vmem:[#allocation11 + $0x68] sm:$0xff] }
 0x192   :  { %715 = vmatprep.subr.mxu1 %v666_v57  ;;  %v817_v57 = vld [vmem:[#allocation11 + $0xb8] sm:$0xff]  ;;  %876 = vmatprep.subr.mxu0 %v819_v55  ;;  %v806_v55 = vld [vmem:[#allocation11 + $0x60] sm:$0xff] }
 0x193   :  { %716 = vmatpush1.msra.mxu1 %v665_v58  ;;  %v816_v58 = vld [vmem:[#allocation11 + $0xb0] sm:$0xff]  ;;  %877 = vmatpush1.msra.mxu0 %v818_v56  ;;  %v805_v56 = vld [vmem:[#allocation11 + $0x58] sm:$0xff] }
 0x194   :  { %717 = vmatprep.subr.mxu1 %v664_v59  ;;  %v815_v59 = vld [vmem:[#allocation11 + $0xa8] sm:$0xff]  ;;  %878 = vmatprep.subr.mxu0 %v817_v57  ;;  %v804_v57 = vld [vmem:[#allocation11 + $0x50] sm:$0xff] }
 0x195   :  { %718 = vmatpush1.msra.mxu1 %v663_v60  ;;  %v814_v60 = vld [vmem:[#allocation11 + $0xa0] sm:$0xff]  ;;  %879 = vmatpush1.msra.mxu0 %v816_v58  ;;  %v803_v58 = vld [vmem:[#allocation11 + $0x48] sm:$0xff] }
 0x196   :  { %719 = vmatprep.subr.mxu1 %v662_v61  ;;  %v813_v61 = vld [vmem:[#allocation11 + $0x98] sm:$0xff]  ;;  %880 = vmatprep.subr.mxu0 %v815_v59  ;;  %v802_v59 = vld [vmem:[#allocation11 + $0x40] sm:$0xff] }
 0x197   :  { %720 = vmatpush1.msra.mxu1 %v661_v62  ;;  %v812_v62 = vld [vmem:[#allocation11 + $0x90] sm:$0xff]  ;;  %881 = vmatpush1.msra.mxu0 %v814_v60  ;;  %v801_v60 = vld [vmem:[#allocation11 + $0x38] sm:$0xff] }
 0x198   :  { %721 = vmatprep.subr.mxu1 %v660_v63  ;;  %v811_v63 = vld [vmem:[#allocation11 + $0x88] sm:$0xff]  ;;  %882 = vmatprep.subr.mxu0 %v813_v61  ;;  %v800_v61 = vld [vmem:[#allocation11 + $0x30] sm:$0xff] }
 0x199   :  { %722 = vmatpush1.msra.mxu1 %v659_v0  ;;  %v810_v0 = vld [vmem:[#allocation11 + $0x80] sm:$0xff]  ;;  %883 = vmatpush1.msra.mxu0 %v812_v62  ;;  %v799_v62 = vld [vmem:[#allocation11 + $0x28] sm:$0xff] }
 0x19a   :  { %723 = vmatprep.subr.mxu1 %v658_v1  ;;  %v809_v1 = vld [vmem:[#allocation11 + $0x78] sm:$0xff]  ;;  %884 = vmatprep.subr.mxu0 %v811_v63  ;;  %v798_v63 = vld [vmem:[#allocation11 + $0x20] sm:$0xff] }
 0x19b   :  { %724 = vmatpush1.msra.mxu1 %v657_v2  ;;  %885 = vmatpush1.msra.mxu0 %v810_v0  ;;  %v369_v2 = vlaneseq  ;;  %v797_v0 = vld [vmem:[#allocation11 + $0x18] sm:$0xff] }
 0x19c   :  { %725 = vmatprep.subr.mxu1 %v656_v3  ;;  %886 = vmatprep.subr.mxu0 %v809_v1  ;;  %v796_v1 = vld [vmem:[#allocation11 + $0x10] sm:$0xff] }
 0x19d   :  { %726 = vmatpush1.msra.mxu1 %v655_v4  ;;  %v1277_v3 = vshrl.u32 %v369_v2, 7  ;;  %887 = vmatpush1.msra.mxu0 %v808_v53  ;;  %v795_v2 = vld [vmem:[#allocation11 + $0x8] sm:$0xff] }
 0x19e   :  { %727 = vmatprep.subr.mxu1 %v654_v5  ;;  %v1283_v5 = vld [vmem:[%s1320_s5] sm:$0x3f]  ;;  %888 = vmatprep.subr.mxu0 %v807_v54 }
 0x19f   :  { %728 = vmatpush1.msra.mxu1 %v653_v6  ;;  %v391_v4 = vsub.s32 5, %v1277_v3  ;;  %889 = vmatpush1.msra.mxu0 %v806_v55  ;;  %v387_v53 = vsub.s32 4, %v1277_v3  ;;  %v383_v54 = vsub.s32 3, %v1277_v3 }
 0x1a0   :  { %729 = vmatprep.subr.mxu1 %v652_v7  ;;  %890 = vmatprep.subr.mxu0 %v805_v56 }
 0x1a1   :  { %730 = vmatpush1.msra.mxu1 %v651_v8  ;;  %v392_v6 = vrot.slane %v1283_v5, %v391_v4  ;;  %891 = vmatpush1.msra.mxu0 %v804_v57  ;;  %v794_v4 = vld [vmem:[#allocation11] sm:$0xff]  ;;  %v388_v55 = vrot.slane %v1283_v5, %v387_v53  ;;  %v384_v56 = vrot.slane %v1283_v5, %v383_v54 }
 0x1a2   :  { %731 = vmatprep.subr.mxu1 %v650_v9  ;;  %892 = vmatprep.subr.mxu0 %v803_v58 }
 0x1a3   :  { %732 = vmatpush1.msra.mxu1 %v649_v10  ;;  %893 = vmatpush1.msra.mxu0 %v802_v59 }
 0x1a4   :  { %733 = vmatprep.subr.mxu1 %v648_v11  ;;  %894 = vmatprep.subr.mxu0 %v801_v60 }
 0x1a5   :  { %734 = vmatpush1.msra.mxu1 %v647_v12  ;;  %895 = vmatpush1.msra.mxu0 %v800_v61 }
 0x1a6   :  { %735 = vmatprep.subr.mxu1 %v646_v13  ;;  %896 = vmatprep.subr.mxu0 %v799_v62 }
 0x1a7   :  { %736 = vmatpush1.msra.mxu1 %v645_v14  ;;  %v375_v14 = vsub.s32 1, %v1277_v3  ;;  %897 = vmatpush1.msra.mxu0 %v798_v63 }
 0x1a8   :  { %737 = vmatprep.subr.mxu1 %v644_v15  ;;  %v371_v15 = vsub.s32 0, %v1277_v3  ;;  %898 = vmatprep.subr.mxu0 %v797_v0 }
 0x1a9   :  { %738 = vmatpush1.msra.mxu1 %v643_v16  ;;  %899 = vmatpush1.msra.mxu0 %v796_v1 }
 0x1aa   :  { %739 = vmatprep.subr.mxu1 %v706_v17  ;;  %900 = vmatprep.subr.mxu0 %v795_v2 }
 0x1ab   :  { %740 = vmatpush2.msra.mxu1 %v705_v18  ;;  %v379_v18 = vsub.s32 2, %v1277_v3  ;;  %901 = vmatpush1.msra.mxu0 %v794_v4  ;;  %v858_v4 = vld [vmem:[%s1323_s8] sm:$0x3]  ;;  %s1185_s8 = smov [#allocation13]  }
 0x1ac   :  { %741 = vmatprep.subr.mxu1 %v704_v19  ;;  %s979_s21 = sshll.u32 %s1185_s8, 4  ;;  %s980_s21 = int_to_ptr.vmem [resolvable:$true] %s979_s21 }
 0x1ad   :  { %742 = vmatpush2.msra.mxu1 %v703_v20  ;;  %s1143_s22 = scalar_lea.vmem %s980_s21, 128  ;;  %p1148_p3 = scmp.lt.s32.totalorder %s980_s21, %s980_s21 }
 0x1ae   :  { %743 = vmatprep.subr.mxu1 %v702_v21  ;;  %v376_v21 = vrot.slane %v1283_v5, %v375_v14  ;;  %p1144_p2 = scmp.ne.s32.totalorder %s980_s21, %s1143_s22  ;;  %p1149_p4 = scmp.lt.s32.totalorder %s1143_s22, %s1143_s22 }
 0x1af   :  { %744 = vmatpush2.msra.mxu1 %v701_v24  ;;  %v372_v24 = vrot.slane %v1283_v5, %v371_v15 }
 0x1b0   :  { %745 = vmatprep.subr.mxu1 %v700_v22  ;;  %p1150_p5 = por %p1149_p4, %p1148_p3 }
 0x1b1   :  { %746 = vmatpush2.msra.mxu1 %v699_v23 }
 0x1b2   :  { %747 = vmatprep.subr.mxu1 %v698_v25  ;;  %p1151_p6 = pnand %p1150_p5, %p1144_p2 }
 0x1b3   :  { %748 = vmatpush2.msra.mxu1 %v697_v26  ;;  %v380_v26 = vrot.slane %v1283_v5, %v379_v18  ;;  %v848_v18 = vld [vmem:[#allocation11 + $0x1b0] sm:$0xff] }
 0x1b4   :  { %749 = vmatprep.subr.mxu1 %v696_v27 }
 0x1b5   :  { %750 = vmatpush2.msra.mxu1 %v695_v28 }
 0x1b6   :  { %751 = vmatprep.subr.mxu1 %v694_v29 }
 0x1b7   :  { %752 = vmatpush2.msra.mxu1 %v693_v30 }
 0x1b8   :  { %753 = vmatprep.subr.mxu1 %v692_v31 }
 0x1b9   :  { %754 = vmatpush2.msra.mxu1 %v691_v32 }
 0x1ba   :  { %755 = vmatprep.subr.mxu1 %v690_v33 }
 0x1bb   :  { %756 = vmatpush2.msra.mxu1 %v689_v34 }
 0x1bc   :  { %757 = vmatprep.subr.mxu1 %v688_v35 }
 0x1bd   :  { %758 = vmatpush2.msra.mxu1 %v687_v36 }
 0x1be   :  { %759 = vmatprep.subr.mxu1 %v686_v37 }
 0x1bf   :  { %760 = vmatpush2.msra.mxu1 %v685_v38 }
 0x1c0   :  { %761 = vmatprep.subr.mxu1 %v684_v39 }
 0x1c1   :  { %762 = vmatpush2.msra.mxu1 %v683_v40 }
 0x1c2   :  { %763 = vmatprep.subr.mxu1 %v682_v41 }
 0x1c3   :  { %764 = vmatpush2.msra.mxu1 %v681_v42 }
 0x1c4   :  { %765 = vmatprep.subr.mxu1 %v680_v43 }
 0x1c5   :  { %766 = vmatpush2.msra.mxu1 %v679_v44 }
 0x1c6   :  { %767 = vmatprep.subr.mxu1 %v678_v45 }
 0x1c7   :  { %768 = vmatpush2.msra.mxu1 %v677_v46 }
 0x1c8   :  { %769 = vmatprep.subr.mxu1 %v676_v47  ;;  %v1184_v47 = vmov -1.0  }
 0x1c9   :  { %770 = vmatpush2.msra.mxu1 %v675_v48 }
 0x22a   :  { %v1286_v7 = vpop.f32.mrf.mxu0  ;;  %v465_v16 = vpop.f32.mrf.mxu1 }
 0x22b   :  { %v466_v30 = vadd.f32 %v465_v16, %v372_v24  ;;  %v850_v16 = vld [vmem:[#allocation11 + $0x1c0] sm:$0xff]  ;;  %v844_v24 = vld [vmem:[#allocation11 + $0x190] sm:$0xff]  ;;  %v608_v57 = vadd.f32 %v1286_v7, %v388_v55 }
 0x22c   :  { %v609_v8 = vpop.f32.mrf.mxu0  ;;  %v467_v22 = vpop.f32.mrf.mxu1 }
 0x22d   :  { %v610_v9 = vadd.f32 %v609_v8, %v392_v6  ;;  %v468_v28 = vadd.f32 %v467_v22, %v376_v21  ;;  %v857_v6 = vld [vmem:[#allocation11 + $0x1f8] sm:$0xff]  ;;  %v856_v8 = vld [vmem:[#allocation11 + $0x1f0] sm:$0xff]  ;;  %v843_v22 = vld [vmem:[#allocation11 + $0x188] sm:$0xff] }
 0x22e   :  { %902 = vmatprep.subr.mxu0 %v857_v6  ;;  %v845_v21 = vld [vmem:[#allocation11 + $0x198] sm:$0xff]  ;;  %v867_v6 = vrot.slane %v858_v4, %v375_v14 }
 0x22f   :  { %v613_v10 = vmul.f32 0.70710677, %v610_v9  ;;  %v641_v36 = vmul.f32 %v468_v28, %v466_v30  ;;  %v612_v50 = vmul.f32 0.5, %v610_v9  ;;  %v855_v9 = vld [vmem:[#allocation11 + $0x1e8] sm:$0xff]  ;;  %903 = vmatpush2.msra.mxu0 %v856_v8  ;;  %v838_v28 = vld [vmem:[#allocation11 + $0x160] sm:$0xff] }
 0x230   :  { %904 = vmatprep.subr.mxu0 %v855_v9 }
 0x231   :  { %v616_v11 = vand.u32 2147483647, %v613_v10  ;;  %vm614_vm0 = vcmp.ge.f32.partialorder %v613_v10, 0.0  ;;  %v854_v10 = vld [vmem:[#allocation11 + $0x1e0] sm:$0xff] }
 0x232   :  { %v615_v48 = vsel %vm614_vm0, 1.0, %v1184_v47  ;;  %905 = vmatpush2.msra.mxu0 %v854_v10 }
 0x233   :  { %v617_v12 = vmul.f32 0.3275911, %v616_v11  ;;  %v632_v17 = vsub.f32 0.0, %v616_v11 }
 0x235   :  { %v618_v13 = vadd.f32 1.0, %v617_v12  ;;  %v633_v25 = vmul.f32 %v632_v17, %v616_v11  ;;  %v853_v11 = vld [vmem:[#allocation11 + $0x1d8] sm:$0xff]  ;;  %v852_v12 = vld [vmem:[#allocation11 + $0x1d0] sm:$0xff] }
 0x236   :  { %906 = vmatprep.subr.mxu0 %v853_v11  ;;  %v849_v17 = vld [vmem:[#allocation11 + $0x1b8] sm:$0xff] }
 0x237   :  { %1008 = vrcp.f32 %v618_v13  ;;  %v634_v31 = vmul.f32 1.442695, %v633_v25  ;;  %907 = vmatpush2.msra.mxu0 %v852_v12  ;;  %v841_v25 = vld [vmem:[#allocation11 + $0x178] sm:$0xff] }
 0x239   :  { %1010 = vpow2.f32 %v634_v31  ;;  %v835_v31 = vld [vmem:[#allocation11 + $0x148] sm:$0xff] }
 0x244   :  { %v1009_v19 = vpop.eup %1008 }
 0x245   :  { %v620_v20 = vmul.f32 %v1009_v19, %v618_v13  ;;  %v851_v13 = vld [vmem:[#allocation11 + $0x1c8] sm:$0xff] }
 0x246   :  { %v1011_v44 = vpop.eup %1010  ;;  %908 = vmatprep.subr.mxu0 %v851_v13 }
 0x247   :  { %v621_v23 = vsub.f32 2.0, %v620_v20  ;;  %909 = vmatpush2.msra.mxu0 %v850_v16  ;;  %v846_v20 = vld [vmem:[#allocation11 + $0x1a0] sm:$0xff] }
 0x248   :  { %910 = vmatprep.subr.mxu0 %v849_v17 }
 0x249   :  { %v622_v27 = vmul.f32 %v1009_v19, %v621_v23  ;;  %v847_v19 = vld [vmem:[#allocation11 + $0x1a8] sm:$0xff]  ;;  %911 = vmatpush2.msra.mxu0 %v848_v18  ;;  %v842_v23 = vld [vmem:[#allocation11 + $0x180] sm:$0xff] }
 0x24a   :  { %v536_v29 = vpop.f32.mrf.mxu1  ;;  %912 = vmatprep.subr.mxu0 %v847_v19 }
 0x24b   :  { %v537_v32 = vadd.f32 %v536_v29, %v380_v26  ;;  %v623_v33 = vmul.f32 1.0614054, %v622_v27  ;;  %913 = vmatpush2.msra.mxu0 %v846_v20  ;;  %v840_v26 = vld [vmem:[#allocation11 + $0x170] sm:$0xff]  ;;  %v837_v29 = vld [vmem:[#allocation11 + $0x158] sm:$0xff] }
 0x24c   :  { %914 = vmatprep.subr.mxu0 %v845_v21 }
 0x24d   :  { %v642_v34 = vmul.f32 %v537_v32, %v466_v30  ;;  %v624_v35 = vadd.f32 -1.4531521, %v623_v33  ;;  %915 = vmatpush2.msra.mxu0 %v844_v24  ;;  %v836_v30 = vld [vmem:[#allocation11 + $0x150] sm:$0xff]  ;;  %v834_v32 = vld [vmem:[#allocation11 + $0x140] sm:$0xff]  ;;  %v833_v33 = vld [vmem:[#allocation11 + $0x138] sm:$0xff] }
 0x24e   :  { %916 = vmatprep.subr.mxu0 %v843_v22 }
 0x24f   :  { %771 = vmatprep.mubr.f32.mxu1 %v642_v34  ;;  %v625_v37 = vmul.f32 %v624_v35, %v622_v27  ;;  %917 = vmatpush2.msra.mxu0 %v842_v23  ;;  %v832_v34 = vld [vmem:[#allocation11 + $0x130] sm:$0xff]  ;;  %v831_v35 = vld [vmem:[#allocation11 + $0x128] sm:$0xff] }
 0x250   :  { %772 = vmatmul.mubr.f32.vlgmr.msra.gmra.mxu1 %v641_v36  ;;  %918 = vmatprep.subr.mxu0 %v841_v25  ;;  %v830_v36 = vld [vmem:[#allocation11 + $0x120] sm:$0xff] }
 0x251   :  { %v626_v38 = vadd.f32 1.4214138, %v625_v37  ;;  %919 = vmatpush2.msra.mxu0 %v840_v26  ;;  %v829_v37 = vld [vmem:[#allocation11 + $0x118] sm:$0xff] }
 0x253   :  { %v627_v39 = vmul.f32 %v626_v38, %v622_v27  ;;  %v828_v38 = vld [vmem:[#allocation11 + $0x110] sm:$0xff] }
 0x255   :  { %v628_v40 = vadd.f32 -0.28449672, %v627_v39  ;;  %v827_v39 = vld [vmem:[#allocation11 + $0x108] sm:$0xff] }
 0x257   :  { %v629_v41 = vmul.f32 %v628_v40, %v622_v27  ;;  %v826_v40 = vld [vmem:[#allocation11 + $0x100] sm:$0xff] }
 0x259   :  { %v630_v42 = vadd.f32 0.2548296, %v629_v41  ;;  %v538_v41 = vpop.f32.mrf.mxu1 }
 0x25a   :  { %v539_v58 = vadd.f32 %v538_v41, %v384_v56 }
 0x25b   :  { %v631_v43 = vmul.f32 %v630_v42, %v622_v27  ;;  %v839_v27 = vld [vmem:[#allocation11 + $0x168] sm:$0xff] }
 0x25c   :  { %920 = vmatprep.subr.mxu0 %v839_v27 }
 0x25d   :  { %v636_v45 = vmul.f32 %v1011_v44, %v631_v43  ;;  %921 = vmatpush2.msra.mxu0 %v838_v28 }
 0x25e   :  { %922 = vmatprep.subr.mxu0 %v837_v29 }
 0x25f   :  { %v637_v46 = vsub.f32 1.0, %v636_v45  ;;  %923 = vmatpush2.msra.mxu0 %v836_v30 }
 0x260   :  { %924 = vmatprep.subr.mxu0 %v835_v31  ;;  %v863_v31 = vrot.slane %v858_v4, %v371_v15 }
 0x261   :  { %v638_v49 = vmul.f32 %v637_v46, %v615_v48  ;;  %925 = vmatpush2.msra.mxu0 %v834_v32 }
 0x262   :  { %926 = vmatprep.subr.mxu0 %v833_v33 }
 0x263   :  { %v639_v51 = vadd.f32 1.0, %v638_v49  ;;  %927 = vmatpush2.msra.mxu0 %v832_v34 }
 0x264   :  { %928 = vmatprep.subr.mxu0 %v831_v35 }
 0x265   :  { %v640_v52 = vmul.f32 %v639_v51, %v612_v50  ;;  %929 = vmatpush2.msra.mxu0 %v830_v36 }
 0x266   :  { %930 = vmatprep.subr.mxu0 %v829_v37 }
 0x267   :  { %934 = vmatprep.mubr.f32.mxu0 %v640_v52  ;;  %931 = vmatpush2.msra.mxu0 %v828_v38 }
 0x268   :  { %932 = vmatprep.subr.mxu0 %v827_v39  ;;  %v1022_v39 = vld [vmem:[#allocation2] sm:$0xff] }
 0x269   :  { %933 = vmatpush2.msra.mxu0 %v826_v40 }
 0x310   :  { %v773_v42 = vpop.f32.mrf.mxu1 }
 0x312   :  { %v775_v43 = vpop.f32.mrf.mxu1 }
 0x313   :  { %v778_v44 = vmax.f32 %v773_v42, %v775_v43 }
 0x315   :  { %v779_v45 = vsub.f32 %v773_v42, %v778_v44  ;;  %v782_v46 = vsub.f32 %v775_v43, %v778_v44 }
 0x317   :  { %v780_v48 = vmul.f32 1.442695, %v779_v45  ;;  %v783_v49 = vmul.f32 1.442695, %v782_v46 }
 0x319   :  { %1012 = vpow2.f32 %v780_v48 }
 0x31a   :  { %1014 = vpow2.f32 %v783_v49 }
 0x326   :  { %v1013_v50 = vpop.eup %1012 }
 0x327   :  { %v1015_v51 = vpop.eup %1014  ;;  %v790_v61 = vmul.f32 %v1013_v50, %v539_v58 }
 0x328   :  { %v785_v52 = vadd.f32 %v1015_v51, %v1013_v50  ;;  %v791_v62 = vmul.f32 %v1015_v51, %v608_v57 }
 0x32a   :  { %1016 = vrcp.f32 %v785_v52  ;;  %v792_v1 = vadd.f32 %v791_v62, %v790_v61 }
 0x337   :  { %v1017_v59 = vpop.eup %1016 }
 0x338   :  { %v787_v60 = vmul.f32 %v1017_v59, %v785_v52 }
 0x33a   :  { %v788_v63 = vsub.f32 2.0, %v787_v60 }
 0x33c   :  { %v789_v0 = vmul.f32 %v1017_v59, %v788_v63 }
 0x33e   :  { %v793_v2 = vmul.f32 %v792_v1, %v789_v0 }
 0x340   :  { %935 = vmatmul.mubr.f32.vlgmr.msra.gmra.mxu0 %v793_v2 }
 0x400   :  { %v936_v5 = vpop.f32.mrf.mxu0 }
 0x401   :  { %v937_v35 = vadd.f32 %v936_v5, %v863_v31 }
 0x402   :  { %v938_v8 = vpop.f32.mrf.mxu0 }
 0x403   :  { %v939_v7 = vadd.f32 %v938_v8, %v867_v6  ;;  %v970_v40 = vadd.f32 %v1022_v39, %v937_v35 }
 0x405   :  { %v942_v9 = vmul.f32 0.70710677, %v939_v7  ;;  %v941_v37 = vmul.f32 0.5, %v939_v7 }
 0x407   :  { %v945_v10 = vand.u32 2147483647, %v942_v9  ;;  %vm943_vm1 = vcmp.ge.f32.partialorder %v942_v9, 0.0 }
 0x408   :  { %v944_v34 = vsel %vm943_vm1, 1.0, %v1184_v47 }
 0x409   :  { %v946_v11 = vmul.f32 0.3275911, %v945_v10  ;;  %v961_v13 = vsub.f32 0.0, %v945_v10 }
 0x40b   :  { %v947_v12 = vadd.f32 1.0, %v946_v11  ;;  %v962_v19 = vmul.f32 %v961_v13, %v945_v10 }
 0x40d   :  { %1018 = vrcp.f32 %v947_v12  ;;  %v963_v24 = vmul.f32 1.442695, %v962_v19 }
 0x40f   :  { %1020 = vpow2.f32 %v963_v24 }
 0x41a   :  { %v1019_v16 = vpop.eup %1018 }
 0x41b   :  { %v949_v17 = vmul.f32 %v1019_v16, %v947_v12 }
 0x41c   :  { %v1021_v30 = vpop.eup %1020 }
 0x41d   :  { %v950_v18 = vsub.f32 2.0, %v949_v17 }
 0x41f   :  { %v951_v20 = vmul.f32 %v1019_v16, %v950_v18 }
 0x421   :  { %v952_v21 = vmul.f32 1.0614054, %v951_v20 }
 0x423   :  { %v953_v22 = vadd.f32 -1.4531521, %v952_v21 }
 0x425   :  { %v954_v23 = vmul.f32 %v953_v22, %v951_v20 }
 0x427   :  { %v955_v14 = vadd.f32 1.4214138, %v954_v23 }
 0x429   :  { %v956_v25 = vmul.f32 %v955_v14, %v951_v20 }
 0x42b   :  { %v957_v26 = vadd.f32 -0.28449672, %v956_v25 }
 0x42d   :  { %v958_v27 = vmul.f32 %v957_v26, %v951_v20 }
 0x42f   :  { %v959_v28 = vadd.f32 0.2548296, %v958_v27 }
 0x431   :  { %v960_v29 = vmul.f32 %v959_v28, %v951_v20 }
 0x433   :  { %v965_v32 = vmul.f32 %v1021_v30, %v960_v29 }
 0x435   :  { %v966_v33 = vsub.f32 1.0, %v965_v32 }
 0x437   :  { %v967_v36 = vmul.f32 %v966_v33, %v944_v34 }
 0x439   :  { %v968_v38 = vadd.f32 1.0, %v967_v36 }
 0x43b   :  { %v969_v41 = vmul.f32 %v968_v38, %v941_v37 }
 0x43d   :  { %v971_v42 = vadd.f32 %v970_v40, %v969_v41 }
 0x43f   :  { %972 = vst [vmem:[#allocation13] sm:$0xff] %v971_v42 }
 0x440   :  { %1154 = shalt.err (!%p1151_p6)
}
 0x441   :  { %982 = dma.vmem_to_hbm [thread:$0]  %s980_s21, 128, %s1324_s9, [#allocation4]  }
 0x442   :  { %1171 = dma.done.wait [#allocation4], 128  }
 0x443   :  { %1172 = vsyncadd [#allocation4], 4294967168 }
 0x444   :  { %986 = vsyncpa [#allocation3], 1 }
 0x445   :  { %987 = vsyncpa [#allocation6], 1 }
 0x446   :  { %988 = vsyncpa [#allocation9], 1 }
 0x447   :  { %989 = vsyncpa [#allocation12], 1 }
 0x448   :  { %990 = vsyncpa [#allocation4], 1 }

</bundles_post_ra>
